<compile_context>
chip_gen: v6e
topology: v6e:2x2x1
jax: 0.10.0
libtpu: 0.0.40
codegen_flags: <defaults>
</compile_context>

<pallas_src>
import functools

import jax
import jax.numpy as jnp
from jax.experimental import pallas as pl
from jax.experimental.pallas import tpu as pltpu


def _layer_norm(x, gamma, beta, eps=1e-5):
    mu = jnp.mean(x, axis=-1, keepdims=True)
    xc = x - mu
    var = jnp.mean(xc * xc, axis=-1, keepdims=True)
    inv = jax.lax.rsqrt(var + eps)
    return xc * inv * gamma + beta


def encoder_block_kernel(n_heads,
                         xq_ref, x_ref, mask_ref,
                         wq_ref, bq_ref, wkv_ref, bkv_ref,
                         wo_ref, bo_ref,
                         g1_ref, be1_ref,
                         w1_ref, b1_ref, w2_ref, b2_ref,
                         g2_ref, be2_ref,
                         out_ref,
                         kh_ref, vh_ref):
    """One EncoderBlock step for a (batch, query-tile) grid cell."""
    qi = pl.program_id(1)
    tq, E = xq_ref.shape[1], xq_ref.shape[2]
    L = x_ref.shape[1]
    dh = E // n_heads

    # ---- K/V projection: once per batch element, fused (E, 2E) weight -------
    # Cached head-batched (H, L, dh) bf16 in VMEM scratch and reused for every
    # query tile (qi axis is "arbitrary", so iteration order is sequential).
    @pl.when(qi == 0)
    def _compute_kv():
        xf_bf = x_ref[0]                                     # (L, E) bf16
        kv = jnp.dot(xf_bf, wkv_ref[...],
                     preferred_element_type=jnp.float32) + bkv_ref[...]
        k = kv[:, :E]
        v = kv[:, E:]
        kh_ref[...] = jnp.transpose(k.reshape(L, n_heads, dh), (1, 0, 2)).astype(jnp.bfloat16)
        vh_ref[...] = jnp.transpose(v.reshape(L, n_heads, dh), (1, 0, 2)).astype(jnp.bfloat16)

    xq_bf = xq_ref[0]                                        # (tq, E) bf16
    xq_f32 = xq_bf.astype(jnp.float32)                       # residual path

    # ---- Q projection (1/sqrt(dh) already folded into wq/bq at init) --------
    q = jnp.dot(xq_bf, wq_ref[...],
                preferred_element_type=jnp.float32) + bq_ref[...]
    qh = jnp.transpose(q.reshape(tq, n_heads, dh), (1, 0, 2)).astype(jnp.bfloat16)

    # ---- Attention scores + softmax (f32) ------------------------------------
    # TODO(synk): for long L, tile over KV blocks (flash-style online softmax)
    # instead of materializing the full (H, tq, L) f32 score block.
    s = jnp.einsum('hqd,hkd->hqk', qh, kh_ref[...],
                   preferred_element_type=jnp.float32)       # (H, tq, L)

    # mask: 1.0 = attend, 0.0 = masked -> additive -1e9 bias (hoisted, 1 add).
    bias = (mask_ref[0].astype(jnp.float32) - 1.0) * 1e9     # (1, L)
    s = s + bias[None, :, :]

    s = s - jnp.max(s, axis=-1, keepdims=True)
    p = jnp.exp(s)
    # approx reciprocal runs on the EUP slot; ~ULP-level deviation vs exact div.
    p = p * pl.reciprocal(jnp.sum(p, axis=-1, keepdims=True), approx=True)

    ctx = jnp.einsum('hqk,hkd->hqd', p.astype(jnp.bfloat16), vh_ref[...],
                     preferred_element_type=jnp.float32)     # (H, tq, dh)

    # ---- Output projection: wo stored (H, dh, E), so no (H,tq,dh)->(tq,E)
    # transpose/reshape relayout; batched per-head matmul then sum over heads.
    attn_h = jnp.einsum('hqd,hde->hqe', ctx.astype(jnp.bfloat16), wo_ref[...],
                        preferred_element_type=jnp.float32)  # (H, tq, E)
    attn = jnp.sum(attn_h, axis=0) + bo_ref[...]             # (tq, E)

    # nn.Dropout is identity in eval mode.
    res1 = _layer_norm(attn + xq_f32, g1_ref[...], be1_ref[...])

    # ---- Feed forward ---------------------------------------------------------
    h1 = jnp.dot(res1.astype(jnp.bfloat16), w1_ref[...],
                 preferred_element_type=jnp.float32) + b1_ref[...]
    h1 = jnp.maximum(h1, 0.0)                                # ReLU
    ff = jnp.dot(h1.astype(jnp.bfloat16), w2_ref[...],
                 preferred_element_type=jnp.float32) + b2_ref[...]

    out = _layer_norm(ff + res1, g2_ref[...], be2_ref[...])
    out_ref[0] = out.astype(out_ref.dtype)


_SINGLE_BUFFER_WEIGHTS = None  # lazily probed: pl.Buffered(1) support on this jax


def _run_encoder_block(x, mask, p, n_heads, tq, single_buffer_weights):
    B, L, E = x.shape
    F = p["w1"].shape[1]
    dh = E // n_heads
    nq = L // tq

    def weight_spec(shape):
        idx = lambda b, qi, _n=len(shape): (0,) * _n
        if single_buffer_weights:
            # Constant-index weights: single-buffer to halve their VMEM
            # footprint (important on v7x's 64 MiB VMEM); nothing to pipeline
            # since the block index never changes.
            return pl.BlockSpec(shape, idx, pipeline_mode=pl.Buffered(1))
        return pl.BlockSpec(shape, idx)

    in_specs = [
        pl.BlockSpec((1, tq, E), lambda b, qi: (b, qi, 0)),   # x query tile (bf16)
        pl.BlockSpec((1, L, E), lambda b, qi: (b, 0, 0)),     # x full, for K/V (bf16)
        pl.BlockSpec((1, 1, L), lambda b, qi: (b, 0, 0)),     # mask
        weight_spec((E, E)), weight_spec((1, E)),             # wq (scaled), bq
        weight_spec((E, 2 * E)), weight_spec((1, 2 * E)),     # wkv, bkv (fused K|V)
        weight_spec((n_heads, dh, E)), weight_spec((1, E)),   # wo (H,dh,E), bo
        weight_spec((1, E)), weight_spec((1, E)),             # ln1 gamma, beta
        weight_spec((E, F)), weight_spec((1, F)),             # ffn w1, b1
        weight_spec((F, E)), weight_spec((1, E)),             # ffn w2, b2
        weight_spec((1, E)), weight_spec((1, E)),             # ln2 gamma, beta
    ]

    # Advisory cost estimate so XLA can overlap the surrounding glue ops.
    flops = (2 * B * L * E * 3 * E            # q/k/v projections
             + 4 * B * L * L * E              # scores + PV
             + 2 * B * L * E * E              # output projection
             + 4 * B * L * E * F)             # feed-forward
    transcendentals = B * n_heads * L * L + 2 * B * L
    bytes_accessed = (2 * (B * L * E * 2) + B * L * 4
                      + (4 * E * E + 2 * E * F) * 2
                      + (10 * E + F) * 4)
    cost = pl.CostEstimate(flops=int(flops),
                           transcendentals=int(transcendentals),
                           bytes_accessed=int(bytes_accessed))

    # VMEM budget from the actual footprint, capped at 48 MiB for v7x headroom.
    bf, f4 = 2, 4
    wbuf = 1 if single_buffer_weights else 2
    est = (wbuf * ((4 * E * E + 2 * E * F) * bf + (10 * E + F) * f4)
           + 2 * (tq * E * bf) * 2                      # xq + out tiles (dbl-buffered)
           + 2 * (L * E * bf) + 2 * (L * f4)            # full x block + mask
           + 2 * (n_heads * L * max(dh, 128) * bf)      # K/V scratch (lane-padded)
           + 4 * (n_heads * tq * L * f4))               # live score/prob working set
    vmem_limit = int(min(max(2 * est, 8 * 2 ** 20), 48 * 2 ** 20))

    kernel = functools.partial(encoder_block_kernel, n_heads)
    return pl.pallas_call(
        kernel,
        out_shape=jax.ShapeDtypeStruct((B, L, E), jnp.bfloat16),
        grid_spec=pltpu.PrefetchScalarGridSpec(
            num_scalar_prefetch=0,
            grid=(B, nq),
            in_specs=in_specs,
            out_specs=pl.BlockSpec((1, tq, E), lambda b, qi: (b, qi, 0)),
            scratch_shapes=[pltpu.VMEM((n_heads, L, dh), jnp.bfloat16),   # K cache
                            pltpu.VMEM((n_heads, L, dh), jnp.bfloat16)],  # V cache
        ),
        compiler_params=pltpu.CompilerParams(
            # K/V scratch is carried across query tiles -> qi axis "arbitrary";
            # batch axis stays "parallel" for megacore sharding.
            dimension_semantics=("parallel", "arbitrary"),
            vmem_limit_bytes=vmem_limit,
        ),
        cost_estimate=cost,
    )(x, x, mask,
      p["wq"], p["bq"], p["wkv"], p["bkv"], p["wo"], p["bo"],
      p["g1"], p["be1"], p["w1"], p["b1"], p["w2"], p["b2"], p["g2"], p["be2"])


def encoder_block_pallas(x, mask, p, n_heads, tq=None):
    global _SINGLE_BUFFER_WEIGHTS
    B, L, E = x.shape
    if tq is None:
        # 256 feeds the 256-wide MXU on v6e/v7x; fall back to 128, else full L.
        if L % 256 == 0:
            tq = 256
        elif L % 128 == 0:
            tq = 128
        else:
            tq = L
    if _SINGLE_BUFFER_WEIGHTS is None:
        try:
            out = _run_encoder_block(x, mask, p, n_heads, tq, True)
            _SINGLE_BUFFER_WEIGHTS = True
            return out
        except Exception:
            _SINGLE_BUFFER_WEIGHTS = False
    return _run_encoder_block(x, mask, p, n_heads, tq, _SINGLE_BUFFER_WEIGHTS)


def init_params(key, n_layers, E, n_heads, expansion, src_vocab, vocab_max):
    F = E * expansion
    dh = E // n_heads
    scale = 1.0 / (dh ** 0.5)
    keys = jax.random.split(key, 2 + n_layers)
    params = {
        "embedding": 0.02 * jax.random.normal(keys[0], (src_vocab, E), jnp.float32),
        "pos_embedding": 0.02 * jax.random.normal(keys[1], (vocab_max, E), jnp.float32),
        "layers": [],
    }
    for i in range(n_layers):
        ks = jax.random.split(keys[2 + i], 6)
        wq = 0.02 * jax.random.normal(ks[0], (E, E), jnp.float32)
        wk = 0.02 * jax.random.normal(ks[1], (E, E), jnp.float32)
        wv = 0.02 * jax.random.normal(ks[2], (E, E), jnp.float32)
        wo = 0.02 * jax.random.normal(ks[3], (E, E), jnp.float32)
        w1 = 0.02 * jax.random.normal(ks[4], (E, F), jnp.float32)
        w2 = 0.02 * jax.random.normal(ks[5], (F, E), jnp.float32)
        lp = {
            # 1/sqrt(dh) folded into the Q projection (one-time, host-side).
            "wq": (wq * scale).astype(jnp.bfloat16),
            "bq": jnp.zeros((1, E), jnp.float32),            # zeros; scale fold is a no-op
            # K and V projections fused into one (E, 2E) weight (single matmul).
            "wkv": jnp.concatenate([wk, wv], axis=1).astype(jnp.bfloat16),
            "bkv": jnp.zeros((1, 2 * E), jnp.float32),
            # Output projection stored head-major (H, dh, E).
            "wo": wo.reshape(n_heads, dh, E).astype(jnp.bfloat16),
            "bo": jnp.zeros((1, E), jnp.float32),
            "g1": jnp.ones((1, E), jnp.float32),
            "be1": jnp.zeros((1, E), jnp.float32),
            "w1": w1.astype(jnp.bfloat16),
            "b1": jnp.zeros((1, F), jnp.float32),
            "w2": w2.astype(jnp.bfloat16),
            "b2": jnp.zeros((1, E), jnp.float32),
            "g2": jnp.ones((1, E), jnp.float32),
            "be2": jnp.zeros((1, E), jnp.float32),
        }
        params["layers"].append(lp)
    return params


def encoder_forward(tokens, mask, params, n_heads):
    """Mirrors Encoder.forward: embed + pos-embed, then N EncoderBlocks (eval)."""
    B, L = tokens.shape
    pos = jnp.arange(L)
    a = params["embedding"][tokens]                          # (B, L, E) gather (glue)
    b = params["pos_embedding"][pos][None, :, :]             # (1, L, E)
    # Dropout = identity in eval mode.  Activations are chained in bf16 between
    # layers (halves HBM read+write per layer); LN/residual math stays f32.
    x = (a + b).astype(jnp.bfloat16)
    # TODO(synk): a fully-fused multi-layer kernel (layer grid axis, per-layer
    # weight index_maps, activations resident in VMEM) would remove per-layer
    # HBM round trips; kept per-layer pallas_calls here.
    for lp in params["layers"]:
        x = encoder_block_pallas(x, mask, lp, n_heads)
    return x.astype(jnp.float32)


if __name__ == "__main__":
    # Small shapes consistent with the module's forward.
    B, L, E = 2, 8, 32
    n_heads, expansion, n_layers = 4, 4, 2
    src_vocab, vocab_max = 50, 16

    key = jax.random.PRNGKey(0)
    k_tok, k_par = jax.random.split(key)
    tokens = jax.random.randint(k_tok, (B, L), 0, src_vocab)
    mask = jnp.ones((B, 1, L), jnp.float32)                  # 1.0 = attend (no padding)

    params = init_params(k_par, n_layers, E, n_heads, expansion, src_vocab, vocab_max)
    out = encoder_forward(tokens, mask, params, n_heads)
    jax.block_until_ready(out)
    assert out.shape == (B, L, E)
    print("KERNEL_OK")
</pallas_src>

<mosaic_0001>
module attributes {stable_mosaic.version = 11 : i64} {
  func.func @encoder_block_kernel(%arg0: i32, %arg1: i32, %arg2: memref<1x8x32xbf16, #tpu.memory_space<vmem>>, %arg3: memref<1x8x32xbf16, #tpu.memory_space<vmem>>, %arg4: memref<1x1x8xf32, #tpu.memory_space<vmem>>, %arg5: memref<32x32xbf16, #tpu.memory_space<vmem>>, %arg6: memref<1x32xf32, #tpu.memory_space<vmem>>, %arg7: memref<32x64xbf16, #tpu.memory_space<vmem>>, %arg8: memref<1x64xf32, #tpu.memory_space<vmem>>, %arg9: memref<4x8x32xbf16, #tpu.memory_space<vmem>>, %arg10: memref<1x32xf32, #tpu.memory_space<vmem>>, %arg11: memref<1x32xf32, #tpu.memory_space<vmem>>, %arg12: memref<1x32xf32, #tpu.memory_space<vmem>>, %arg13: memref<32x128xbf16, #tpu.memory_space<vmem>>, %arg14: memref<1x128xf32, #tpu.memory_space<vmem>>, %arg15: memref<128x32xbf16, #tpu.memory_space<vmem>>, %arg16: memref<1x32xf32, #tpu.memory_space<vmem>>, %arg17: memref<1x32xf32, #tpu.memory_space<vmem>>, %arg18: memref<1x32xf32, #tpu.memory_space<vmem>>, %arg19: memref<1x8x32xbf16, #tpu.memory_space<vmem>>, %arg20: memref<4x8x8xbf16, #tpu.memory_space<vmem>>, %arg21: memref<4x8x8xbf16, #tpu.memory_space<vmem>>) attributes {dimension_semantics = [#tpu.dimension_semantics<parallel>, #tpu.dimension_semantics<arbitrary>], iteration_bounds = array<i64: 2, 1>, scalar_prefetch = 0 : i64, scratch_operands = 2 : i64, tpu.core_type = #tpu.core_type<tc>, window_params = [{transform_indices = @transform_0, window_bounds = array<i64: 1, 8, 32>}, {transform_indices = @transform_1, window_bounds = array<i64: 1, 8, 32>}, {transform_indices = @transform_2, window_bounds = array<i64: 1, 1, 8>}, {pipeline_mode = #tpu.pipeline_mode<synchronous>, transform_indices = @transform_3, window_bounds = array<i64: 32, 32>}, {pipeline_mode = #tpu.pipeline_mode<synchronous>, transform_indices = @transform_4, window_bounds = array<i64: 1, 32>}, {pipeline_mode = #tpu.pipeline_mode<synchronous>, transform_indices = @transform_5, window_bounds = array<i64: 32, 64>}, {pipeline_mode = #tpu.pipeline_mode<synchronous>, transform_indices = @transform_6, window_bounds = array<i64: 1, 64>}, {pipeline_mode = #tpu.pipeline_mode<synchronous>, transform_indices = @transform_7, window_bounds = array<i64: 4, 8, 32>}, {pipeline_mode = #tpu.pipeline_mode<synchronous>, transform_indices = @transform_8, window_bounds = array<i64: 1, 32>}, {pipeline_mode = #tpu.pipeline_mode<synchronous>, transform_indices = @transform_9, window_bounds = array<i64: 1, 32>}, {pipeline_mode = #tpu.pipeline_mode<synchronous>, transform_indices = @transform_10, window_bounds = array<i64: 1, 32>}, {pipeline_mode = #tpu.pipeline_mode<synchronous>, transform_indices = @transform_11, window_bounds = array<i64: 32, 128>}, {pipeline_mode = #tpu.pipeline_mode<synchronous>, transform_indices = @transform_12, window_bounds = array<i64: 1, 128>}, {pipeline_mode = #tpu.pipeline_mode<synchronous>, transform_indices = @transform_13, window_bounds = array<i64: 128, 32>}, {pipeline_mode = #tpu.pipeline_mode<synchronous>, transform_indices = @transform_14, window_bounds = array<i64: 1, 32>}, {pipeline_mode = #tpu.pipeline_mode<synchronous>, transform_indices = @transform_15, window_bounds = array<i64: 1, 32>}, {pipeline_mode = #tpu.pipeline_mode<synchronous>, transform_indices = @transform_16, window_bounds = array<i64: 1, 32>}, {transform_indices = @transform_17, window_bounds = array<i64: 1, 8, 32>}]} {
    %c0_i32 = arith.constant 0 : i32
    %0 = arith.cmpi eq, %arg1, %c0_i32 : i32
    %1 = arith.extui %0 : i1 to i32
    %c0_i32_0 = arith.constant 0 : i32
    %2 = arith.cmpi ne, %1, %c0_i32_0 : i32
    scf.if %2 {
      %c0_61 = arith.constant 0 : index
      %c0_62 = arith.constant 0 : index
      %c0_63 = arith.constant 0 : index
      %109 = vector.load %arg3[%c0_61, %c0_62, %c0_63] : memref<1x8x32xbf16, #tpu.memory_space<vmem>>, vector<1x8x32xbf16>
      %110 = vector.shape_cast %109 : vector<1x8x32xbf16> to vector<8x32xbf16>
      %c0_64 = arith.constant 0 : index
      %c0_65 = arith.constant 0 : index
      %111 = vector.load %arg7[%c0_64, %c0_65] : memref<32x64xbf16, #tpu.memory_space<vmem>>, vector<32x64xbf16>
      %cst_66 = arith.constant dense<0.000000e+00> : vector<8x64xf32>
      %112 = tpu.matmul %110, %111, %cst_66 {dimension_numbers = #tpu.dot_dimension_numbers<[1], [0], [0], [1], [0, 0, 1, 1], [], []>} : vector<8x32xbf16>, vector<32x64xbf16>, vector<8x64xf32> -> vector<8x64xf32>
      %c0_67 = arith.constant 0 : index
      %c0_68 = arith.constant 0 : index
      %113 = vector.load %arg8[%c0_67, %c0_68] : memref<1x64xf32, #tpu.memory_space<vmem>>, vector<1x64xf32>
      %114 = vector.broadcast %113 : vector<1x64xf32> to vector<8x64xf32>
      %115 = arith.addf %112, %114 : vector<8x64xf32>
      %116 = vector.extract_strided_slice %115 {offsets = [0, 0], sizes = [8, 32], strides = [1, 1]} : vector<8x64xf32> to vector<8x32xf32>
      %117 = vector.extract_strided_slice %115 {offsets = [0, 32], sizes = [8, 32], strides = [1, 1]} : vector<8x64xf32> to vector<8x32xf32>
      %118 = vector.shape_cast %116 : vector<8x32xf32> to vector<8x4x8xf32>
      %119 = tpu.transpose %118, [1, 0, 2] : vector<8x4x8xf32> -> vector<4x8x8xf32>
      %120 = arith.truncf %119 : vector<4x8x8xf32> to vector<4x8x8xbf16>
      %c0_69 = arith.constant 0 : index
      %c0_70 = arith.constant 0 : index
      %c0_71 = arith.constant 0 : index
      %121 = vector.load %arg20[%c0_69, %c0_70, %c0_71] : memref<4x8x8xbf16, #tpu.memory_space<vmem>>, vector<4x8x8xbf16>
      tpu.vector_store %arg20[%c0_69, %c0_70, %c0_71], %120 {strides = array<i32>} : memref<4x8x8xbf16, #tpu.memory_space<vmem>>, vector<4x8x8xbf16>,
      %122 = vector.shape_cast %117 : vector<8x32xf32> to vector<8x4x8xf32>
      %123 = tpu.transpose %122, [1, 0, 2] : vector<8x4x8xf32> -> vector<4x8x8xf32>
      %124 = arith.truncf %123 : vector<4x8x8xf32> to vector<4x8x8xbf16>
      %c0_72 = arith.constant 0 : index
      %c0_73 = arith.constant 0 : index
      %c0_74 = arith.constant 0 : index
      %125 = vector.load %arg21[%c0_72, %c0_73, %c0_74] : memref<4x8x8xbf16, #tpu.memory_space<vmem>>, vector<4x8x8xbf16>
      tpu.vector_store %arg21[%c0_72, %c0_73, %c0_74], %124 {strides = array<i32>} : memref<4x8x8xbf16, #tpu.memory_space<vmem>>, vector<4x8x8xbf16>,
    } else {
    }
    %c0 = arith.constant 0 : index
    %c0_1 = arith.constant 0 : index
    %c0_2 = arith.constant 0 : index
    %3 = vector.load %arg2[%c0, %c0_1, %c0_2] : memref<1x8x32xbf16, #tpu.memory_space<vmem>>, vector<1x8x32xbf16>
    %4 = vector.shape_cast %3 : vector<1x8x32xbf16> to vector<8x32xbf16>
    %5 = arith.extf %4 : vector<8x32xbf16> to vector<8x32xf32>
    %c0_3 = arith.constant 0 : index
    %c0_4 = arith.constant 0 : index
    %6 = vector.load %arg5[%c0_3, %c0_4] : memref<32x32xbf16, #tpu.memory_space<vmem>>, vector<32x32xbf16>
    %cst = arith.constant dense<0.000000e+00> : vector<8x32xf32>
    %7 = tpu.matmul %4, %6, %cst {dimension_numbers = #tpu.dot_dimension_numbers<[1], [0], [0], [1], [0, 0, 1, 1], [], []>} : vector<8x32xbf16>, vector<32x32xbf16>, vector<8x32xf32> -> vector<8x32xf32>
    %c0_5 = arith.constant 0 : index
    %c0_6 = arith.constant 0 : index
    %8 = vector.load %arg6[%c0_5, %c0_6] : memref<1x32xf32, #tpu.memory_space<vmem>>, vector<1x32xf32>
    %9 = vector.broadcast %8 : vector<1x32xf32> to vector<8x32xf32>
    %10 = arith.addf %7, %9 : vector<8x32xf32>
    %11 = vector.shape_cast %10 : vector<8x32xf32> to vector<8x4x8xf32>
    %12 = tpu.transpose %11, [1, 0, 2] : vector<8x4x8xf32> -> vector<4x8x8xf32>
    %13 = arith.truncf %12 : vector<4x8x8xf32> to vector<4x8x8xbf16>
    %c0_7 = arith.constant 0 : index
    %c0_8 = arith.constant 0 : index
    %c0_9 = arith.constant 0 : index
    %14 = vector.load %arg20[%c0_7, %c0_8, %c0_9] : memref<4x8x8xbf16, #tpu.memory_space<vmem>>, vector<4x8x8xbf16>
    "tpu.trace_start"() <{level = 10 : i32, message = "hqd,hkd->hqk"}> : () -> ()
    %cst_10 = arith.constant dense<0.000000e+00> : vector<4x8x8xf32>
    %15 = tpu.matmul %13, %14, %cst_10 {dimension_numbers = #tpu.dot_dimension_numbers<[2], [2], [1], [1], [0, 0, 0, 1, 1, 1], [0], [0]>} : vector<4x8x8xbf16>, vector<4x8x8xbf16>, vector<4x8x8xf32> -> vector<4x8x8xf32>
    "tpu.trace_stop"() : () -> ()
    %c0_11 = arith.constant 0 : index
    %c0_12 = arith.constant 0 : index
    %c0_13 = arith.constant 0 : index
    %16 = vector.load %arg4[%c0_11, %c0_12, %c0_13] : memref<1x1x8xf32, #tpu.memory_space<vmem>>, vector<1x1x8xf32>
    %17 = vector.shape_cast %16 : vector<1x1x8xf32> to vector<1x8xf32>
    %cst_14 = arith.constant 1.000000e+00 : f32
    %18 = vector.broadcast %cst_14 : f32 to vector<1x8xf32>
    %19 = arith.subf %17, %18 : vector<1x8xf32>
    %cst_15 = arith.constant 1.000000e+09 : f32
    %20 = vector.broadcast %cst_15 : f32 to vector<1x8xf32>
    %21 = arith.mulf %19, %20 : vector<1x8xf32>
    %22 = vector.shape_cast %21 : vector<1x8xf32> to vector<1x1x8xf32>
    %23 = vector.broadcast %22 : vector<1x1x8xf32> to vector<4x8x8xf32>
    %24 = arith.addf %15, %23 : vector<4x8x8xf32>
    %cst_16 = arith.constant dense<0xFF800000> : vector<4x8xf32>
    %25 = vector.multi_reduction <maximumf>, %24, %cst_16 [2] : vector<4x8x8xf32> to vector<4x8xf32>
    %26 = vector.shape_cast %25 : vector<4x8xf32> to vector<4x8x1xf32>
    %27 = vector.broadcast %26 : vector<4x8x1xf32> to vector<4x8x8xf32>
    %28 = arith.subf %24, %27 : vector<4x8x8xf32>
    %29 = math.exp %28 : vector<4x8x8xf32>
    %cst_17 = arith.constant dense<0.000000e+00> : vector<4x8xf32>
    %30 = vector.multi_reduction <add>, %29, %cst_17 [2] : vector<4x8x8xf32> to vector<4x8xf32>
    %31 = vector.shape_cast %30 : vector<4x8xf32> to vector<4x8x1xf32>
    %32 = tpu.reciprocal %31 {approx = true} : vector<4x8x1xf32> -> vector<4x8x1xf32>
    %33 = vector.broadcast %32 : vector<4x8x1xf32> to vector<4x8x8xf32>
    %34 = arith.mulf %29, %33 : vector<4x8x8xf32>
    %35 = arith.truncf %34 : vector<4x8x8xf32> to vector<4x8x8xbf16>
    %c0_18 = arith.constant 0 : index
    %c0_19 = arith.constant 0 : index
    %c0_20 = arith.constant 0 : index
    %36 = vector.load %arg21[%c0_18, %c0_19, %c0_20] : memref<4x8x8xbf16, #tpu.memory_space<vmem>>, vector<4x8x8xbf16>
    "tpu.trace_start"() <{level = 10 : i32, message = "hqk,hkd->hqd"}> : () -> ()
    %cst_21 = arith.constant dense<0.000000e+00> : vector<4x8x8xf32>
    %37 = tpu.matmul %35, %36, %cst_21 {dimension_numbers = #tpu.dot_dimension_numbers<[2], [1], [1], [2], [0, 0, 0, 1, 1, 2], [0], [0]>} : vector<4x8x8xbf16>, vector<4x8x8xbf16>, vector<4x8x8xf32> -> vector<4x8x8xf32>
    "tpu.trace_stop"() : () -> ()
    %38 = arith.truncf %37 : vector<4x8x8xf32> to vector<4x8x8xbf16>
    %c0_22 = arith.constant 0 : index
    %c0_23 = arith.constant 0 : index
    %c0_24 = arith.constant 0 : index
    %39 = vector.load %arg9[%c0_22, %c0_23, %c0_24] : memref<4x8x32xbf16, #tpu.memory_space<vmem>>, vector<4x8x32xbf16>
    "tpu.trace_start"() <{level = 10 : i32, message = "hqd,hde->hqe"}> : () -> ()
    %cst_25 = arith.constant dense<0.000000e+00> : vector<4x8x32xf32>
    %40 = tpu.matmul %38, %39, %cst_25 {dimension_numbers = #tpu.dot_dimension_numbers<[2], [1], [1], [2], [0, 0, 0, 1, 1, 2], [0], [0]>} : vector<4x8x8xbf16>, vector<4x8x32xbf16>, vector<4x8x32xf32> -> vector<4x8x32xf32>
    "tpu.trace_stop"() : () -> ()
    %cst_26 = arith.constant dense<0.000000e+00> : vector<8x32xf32>
    %41 = vector.multi_reduction <add>, %40, %cst_26 [0] : vector<4x8x32xf32> to vector<8x32xf32>
    %c0_27 = arith.constant 0 : index
    %c0_28 = arith.constant 0 : index
    %42 = vector.load %arg10[%c0_27, %c0_28] : memref<1x32xf32, #tpu.memory_space<vmem>>, vector<1x32xf32>
    %43 = vector.broadcast %42 : vector<1x32xf32> to vector<8x32xf32>
    %44 = arith.addf %41, %43 : vector<8x32xf32>
    %45 = arith.addf %44, %5 : vector<8x32xf32>
    %c0_29 = arith.constant 0 : index
    %c0_30 = arith.constant 0 : index
    %46 = vector.load %arg11[%c0_29, %c0_30] : memref<1x32xf32, #tpu.memory_space<vmem>>, vector<1x32xf32>
    %c0_31 = arith.constant 0 : index
    %c0_32 = arith.constant 0 : index
    %47 = vector.load %arg12[%c0_31, %c0_32] : memref<1x32xf32, #tpu.memory_space<vmem>>, vector<1x32xf32>
    %cst_33 = arith.constant dense<0.000000e+00> : vector<8xf32>
    %48 = vector.multi_reduction <add>, %45, %cst_33 [1] : vector<8x32xf32> to vector<8xf32>
    %49 = vector.shape_cast %48 : vector<8xf32> to vector<8x1xf32>
    %cst_34 = arith.constant 3.200000e+01 : f32
    %50 = vector.broadcast %cst_34 : f32 to vector<8x1xf32>
    %51 = arith.divf %49, %50 : vector<8x1xf32>
    %52 = vector.broadcast %51 : vector<8x1xf32> to vector<8x32xf32>
    %53 = arith.subf %45, %52 : vector<8x32xf32>
    %54 = arith.mulf %53, %53 : vector<8x32xf32>
    %cst_35 = arith.constant dense<0.000000e+00> : vector<8xf32>
    %55 = vector.multi_reduction <add>, %54, %cst_35 [1] : vector<8x32xf32> to vector<8xf32>
    %56 = vector.shape_cast %55 : vector<8xf32> to vector<8x1xf32>
    %cst_36 = arith.constant 3.200000e+01 : f32
    %57 = vector.broadcast %cst_36 : f32 to vector<8x1xf32>
    %58 = arith.divf %56, %57 : vector<8x1xf32>
    %cst_37 = arith.constant 9.99999974E-6 : f32
    %59 = vector.broadcast %cst_37 : f32 to vector<8x1xf32>
    %60 = arith.addf %58, %59 : vector<8x1xf32>
    %61 = math.rsqrt %60 : vector<8x1xf32>
    %62 = vector.broadcast %61 : vector<8x1xf32> to vector<8x32xf32>
    %63 = arith.mulf %53, %62 : vector<8x32xf32>
    %64 = vector.broadcast %46 : vector<1x32xf32> to vector<8x32xf32>
    %65 = arith.mulf %63, %64 : vector<8x32xf32>
    %66 = vector.broadcast %47 : vector<1x32xf32> to vector<8x32xf32>
    %67 = arith.addf %65, %66 : vector<8x32xf32>
    %68 = arith.truncf %67 : vector<8x32xf32> to vector<8x32xbf16>
    %c0_38 = arith.constant 0 : index
    %c0_39 = arith.constant 0 : index
    %69 = vector.load %arg13[%c0_38, %c0_39] : memref<32x128xbf16, #tpu.memory_space<vmem>>, vector<32x128xbf16>
    %cst_40 = arith.constant dense<0.000000e+00> : vector<8x128xf32>
    %70 = tpu.matmul %68, %69, %cst_40 {dimension_numbers = #tpu.dot_dimension_numbers<[1], [0], [0], [1], [0, 0, 1, 1], [], []>} : vector<8x32xbf16>, vector<32x128xbf16>, vector<8x128xf32> -> vector<8x128xf32>
    %c0_41 = arith.constant 0 : index
    %c0_42 = arith.constant 0 : index
    %71 = vector.load %arg14[%c0_41, %c0_42] : memref<1x128xf32, #tpu.memory_space<vmem>>, vector<1x128xf32>
    %72 = vector.broadcast %71 : vector<1x128xf32> to vector<8x128xf32>
    %73 = arith.addf %70, %72 : vector<8x128xf32>
    %cst_43 = arith.constant 0.000000e+00 : f32
    %74 = vector.broadcast %cst_43 : f32 to vector<8x128xf32>
    %75 = arith.maximumf %73, %74 : vector<8x128xf32>
    %76 = arith.truncf %75 : vector<8x128xf32> to vector<8x128xbf16>
    %c0_44 = arith.constant 0 : index
    %c0_45 = arith.constant 0 : index
    %77 = vector.load %arg15[%c0_44, %c0_45] : memref<128x32xbf16, #tpu.memory_space<vmem>>, vector<128x32xbf16>
    %cst_46 = arith.constant dense<0.000000e+00> : vector<8x32xf32>
    %78 = tpu.matmul %76, %77, %cst_46 {dimension_numbers = #tpu.dot_dimension_numbers<[1], [0], [0], [1], [0, 0, 1, 1], [], []>} : vector<8x128xbf16>, vector<128x32xbf16>, vector<8x32xf32> -> vector<8x32xf32>
    %c0_47 = arith.constant 0 : index
    %c0_48 = arith.constant 0 : index
    %79 = vector.load %arg16[%c0_47, %c0_48] : memref<1x32xf32, #tpu.memory_space<vmem>>, vector<1x32xf32>
    %80 = vector.broadcast %79 : vector<1x32xf32> to vector<8x32xf32>
    %81 = arith.addf %78, %80 : vector<8x32xf32>
    %82 = arith.addf %81, %67 : vector<8x32xf32>
    %c0_49 = arith.constant 0 : index
    %c0_50 = arith.constant 0 : index
    %83 = vector.load %arg17[%c0_49, %c0_50] : memref<1x32xf32, #tpu.memory_space<vmem>>, vector<1x32xf32>
    %c0_51 = arith.constant 0 : index
    %c0_52 = arith.constant 0 : index
    %84 = vector.load %arg18[%c0_51, %c0_52] : memref<1x32xf32, #tpu.memory_space<vmem>>, vector<1x32xf32>
    %cst_53 = arith.constant dense<0.000000e+00> : vector<8xf32>
    %85 = vector.multi_reduction <add>, %82, %cst_53 [1] : vector<8x32xf32> to vector<8xf32>
    %86 = vector.shape_cast %85 : vector<8xf32> to vector<8x1xf32>
    %cst_54 = arith.constant 3.200000e+01 : f32
    %87 = vector.broadcast %cst_54 : f32 to vector<8x1xf32>
    %88 = arith.divf %86, %87 : vector<8x1xf32>
    %89 = vector.broadcast %88 : vector<8x1xf32> to vector<8x32xf32>
    %90 = arith.subf %82, %89 : vector<8x32xf32>
    %91 = arith.mulf %90, %90 : vector<8x32xf32>
    %cst_55 = arith.constant dense<0.000000e+00> : vector<8xf32>
    %92 = vector.multi_reduction <add>, %91, %cst_55 [1] : vector<8x32xf32> to vector<8xf32>
    %93 = vector.shape_cast %92 : vector<8xf32> to vector<8x1xf32>
    %cst_56 = arith.constant 3.200000e+01 : f32
    %94 = vector.broadcast %cst_56 : f32 to vector<8x1xf32>
    %95 = arith.divf %93, %94 : vector<8x1xf32>
    %cst_57 = arith.constant 9.99999974E-6 : f32
    %96 = vector.broadcast %cst_57 : f32 to vector<8x1xf32>
    %97 = arith.addf %95, %96 : vector<8x1xf32>
    %98 = math.rsqrt %97 : vector<8x1xf32>
    %99 = vector.broadcast %98 : vector<8x1xf32> to vector<8x32xf32>
    %100 = arith.mulf %90, %99 : vector<8x32xf32>
    %101 = vector.broadcast %83 : vector<1x32xf32> to vector<8x32xf32>
    %102 = arith.mulf %100, %101 : vector<8x32xf32>
    %103 = vector.broadcast %84 : vector<1x32xf32> to vector<8x32xf32>
    %104 = arith.addf %102, %103 : vector<8x32xf32>
    %105 = arith.truncf %104 : vector<8x32xf32> to vector<8x32xbf16>
    %c0_58 = arith.constant 0 : index
    %c0_59 = arith.constant 0 : index
    %c0_60 = arith.constant 0 : index
    %106 = vector.load %arg19[%c0_58, %c0_59, %c0_60] : memref<1x8x32xbf16, #tpu.memory_space<vmem>>, vector<1x8x32xbf16>
    %107 = vector.shape_cast %106 : vector<1x8x32xbf16> to vector<8x32xbf16>
    %108 = vector.shape_cast %105 : vector<8x32xbf16> to vector<1x8x32xbf16>
    tpu.vector_store %arg19[%c0_58, %c0_59, %c0_60], %108 {strides = array<i32>} : memref<1x8x32xbf16, #tpu.memory_space<vmem>>, vector<1x8x32xbf16>,
    return
  }
  func.func @transform_0(%arg0: i32, %arg1: i32) -> (i32, i32, i32) {
    %c0_i32 = arith.constant 0 : i32
    %c0_i32_0 = arith.constant 0 : i32
    return %arg0, %arg1, %c0_i32 : i32, i32, i32
  }
  func.func @transform_1(%arg0: i32, %arg1: i32) -> (i32, i32, i32) {
    %c0_i32 = arith.constant 0 : i32
    %c0_i32_0 = arith.constant 0 : i32
    %c0_i32_1 = arith.constant 0 : i32
    return %arg0, %c0_i32, %c0_i32_0 : i32, i32, i32
  }
  func.func @transform_2(%arg0: i32, %arg1: i32) -> (i32, i32, i32) {
    %c0_i32 = arith.constant 0 : i32
    %c0_i32_0 = arith.constant 0 : i32
    %c0_i32_1 = arith.constant 0 : i32
    return %arg0, %c0_i32, %c0_i32_0 : i32, i32, i32
  }
  func.func @transform_3(%arg0: i32, %arg1: i32) -> (i32, i32) {
    %c0_i32 = arith.constant 0 : i32
    %c0_i32_0 = arith.constant 0 : i32
    %c0_i32_1 = arith.constant 0 : i32
    return %c0_i32, %c0_i32_0 : i32, i32
  }
  func.func @transform_4(%arg0: i32, %arg1: i32) -> (i32, i32) {
    %c0_i32 = arith.constant 0 : i32
    %c0_i32_0 = arith.constant 0 : i32
    %c0_i32_1 = arith.constant 0 : i32
    return %c0_i32, %c0_i32_0 : i32, i32
  }
  func.func @transform_5(%arg0: i32, %arg1: i32) -> (i32, i32) {
    %c0_i32 = arith.constant 0 : i32
    %c0_i32_0 = arith.constant 0 : i32
    %c0_i32_1 = arith.constant 0 : i32
    return %c0_i32, %c0_i32_0 : i32, i32
  }
  func.func @transform_6(%arg0: i32, %arg1: i32) -> (i32, i32) {
    %c0_i32 = arith.constant 0 : i32
    %c0_i32_0 = arith.constant 0 : i32
    %c0_i32_1 = arith.constant 0 : i32
    return %c0_i32, %c0_i32_0 : i32, i32
  }
  func.func @transform_7(%arg0: i32, %arg1: i32) -> (i32, i32, i32) {
    %c0_i32 = arith.constant 0 : i32
    %c0_i32_0 = arith.constant 0 : i32
    %c0_i32_1 = arith.constant 0 : i32
    %c0_i32_2 = arith.constant 0 : i32
    return %c0_i32, %c0_i32_0, %c0_i32_1 : i32, i32, i32
  }
  func.func @transform_8(%arg0: i32, %arg1: i32) -> (i32, i32) {
    %c0_i32 = arith.constant 0 : i32
    %c0_i32_0 = arith.constant 0 : i32
    %c0_i32_1 = arith.constant 0 : i32
    return %c0_i32, %c0_i32_0 : i32, i32
  }
  func.func @transform_9(%arg0: i32, %arg1: i32) -> (i32, i32) {
    %c0_i32 = arith.constant 0 : i32
    %c0_i32_0 = arith.constant 0 : i32
    %c0_i32_1 = arith.constant 0 : i32
    return %c0_i32, %c0_i32_0 : i32, i32
  }
  func.func @transform_10(%arg0: i32, %arg1: i32) -> (i32, i32) {
    %c0_i32 = arith.constant 0 : i32
    %c0_i32_0 = arith.constant 0 : i32
    %c0_i32_1 = arith.constant 0 : i32
    return %c0_i32, %c0_i32_0 : i32, i32
  }
  func.func @transform_11(%arg0: i32, %arg1: i32) -> (i32, i32) {
    %c0_i32 = arith.constant 0 : i32
    %c0_i32_0 = arith.constant 0 : i32
    %c0_i32_1 = arith.constant 0 : i32
    return %c0_i32, %c0_i32_0 : i32, i32
  }
  func.func @transform_12(%arg0: i32, %arg1: i32) -> (i32, i32) {
    %c0_i32 = arith.constant 0 : i32
    %c0_i32_0 = arith.constant 0 : i32
    %c0_i32_1 = arith.constant 0 : i32
    return %c0_i32, %c0_i32_0 : i32, i32
  }
  func.func @transform_13(%arg0: i32, %arg1: i32) -> (i32, i32) {
    %c0_i32 = arith.constant 0 : i32
    %c0_i32_0 = arith.constant 0 : i32
    %c0_i32_1 = arith.constant 0 : i32
    return %c0_i32, %c0_i32_0 : i32, i32
  }
  func.func @transform_14(%arg0: i32, %arg1: i32) -> (i32, i32) {
    %c0_i32 = arith.constant 0 : i32
    %c0_i32_0 = arith.constant 0 : i32
    %c0_i32_1 = arith.constant 0 : i32
    return %c0_i32, %c0_i32_0 : i32, i32
  }
  func.func @transform_15(%arg0: i32, %arg1: i32) -> (i32, i32) {
    %c0_i32 = arith.constant 0 : i32
    %c0_i32_0 = arith.constant 0 : i32
    %c0_i32_1 = arith.constant 0 : i32
    return %c0_i32, %c0_i32_0 : i32, i32
  }
  func.func @transform_16(%arg0: i32, %arg1: i32) -> (i32, i32) {
    %c0_i32 = arith.constant 0 : i32
    %c0_i32_0 = arith.constant 0 : i32
    %c0_i32_1 = arith.constant 0 : i32
    return %c0_i32, %c0_i32_0 : i32, i32
  }
  func.func @transform_17(%arg0: i32, %arg1: i32) -> (i32, i32, i32) {
    %c0_i32 = arith.constant 0 : i32
    %c0_i32_0 = arith.constant 0 : i32
    return %arg0, %arg1, %c0_i32 : i32, i32, i32
  }
}

module attributes {stable_mosaic.version = 11 : i64} {
  func.func @encoder_block_kernel(%arg0: i32, %arg1: i32, %arg2: memref<1x8x32xbf16, #tpu.memory_space<vmem>>, %arg3: memref<1x8x32xbf16, #tpu.memory_space<vmem>>, %arg4: memref<1x1x8xf32, #tpu.memory_space<vmem>>, %arg5: memref<32x32xbf16, #tpu.memory_space<vmem>>, %arg6: memref<1x32xf32, #tpu.memory_space<vmem>>, %arg7: memref<32x64xbf16, #tpu.memory_space<vmem>>, %arg8: memref<1x64xf32, #tpu.memory_space<vmem>>, %arg9: memref<4x8x32xbf16, #tpu.memory_space<vmem>>, %arg10: memref<1x32xf32, #tpu.memory_space<vmem>>, %arg11: memref<1x32xf32, #tpu.memory_space<vmem>>, %arg12: memref<1x32xf32, #tpu.memory_space<vmem>>, %arg13: memref<32x128xbf16, #tpu.memory_space<vmem>>, %arg14: memref<1x128xf32, #tpu.memory_space<vmem>>, %arg15: memref<128x32xbf16, #tpu.memory_space<vmem>>, %arg16: memref<1x32xf32, #tpu.memory_space<vmem>>, %arg17: memref<1x32xf32, #tpu.memory_space<vmem>>, %arg18: memref<1x32xf32, #tpu.memory_space<vmem>>, %arg19: memref<1x8x32xbf16, #tpu.memory_space<vmem>>, %arg20: memref<4x8x8xbf16, #tpu.memory_space<vmem>>, %arg21: memref<4x8x8xbf16, #tpu.memory_space<vmem>>) attributes {dimension_semantics = [#tpu.dimension_semantics<parallel>, #tpu.dimension_semantics<arbitrary>], iteration_bounds = array<i64: 2, 1>, scalar_prefetch = 0 : i64, scratch_operands = 2 : i64, tpu.core_type = #tpu.core_type<tc>, window_params = [{transform_indices = @transform_0, window_bounds = array<i64: 1, 8, 32>}, {transform_indices = @transform_1, window_bounds = array<i64: 1, 8, 32>}, {transform_indices = @transform_2, window_bounds = array<i64: 1, 1, 8>}, {pipeline_mode = #tpu.pipeline_mode<synchronous>, transform_indices = @transform_3, window_bounds = array<i64: 32, 32>}, {pipeline_mode = #tpu.pipeline_mode<synchronous>, transform_indices = @transform_4, window_bounds = array<i64: 1, 32>}, {pipeline_mode = #tpu.pipeline_mode<synchronous>, transform_indices = @transform_5, window_bounds = array<i64: 32, 64>}, {pipeline_mode = #tpu.pipeline_mode<synchronous>, transform_indices = @transform_6, window_bounds = array<i64: 1, 64>}, {pipeline_mode = #tpu.pipeline_mode<synchronous>, transform_indices = @transform_7, window_bounds = array<i64: 4, 8, 32>}, {pipeline_mode = #tpu.pipeline_mode<synchronous>, transform_indices = @transform_8, window_bounds = array<i64: 1, 32>}, {pipeline_mode = #tpu.pipeline_mode<synchronous>, transform_indices = @transform_9, window_bounds = array<i64: 1, 32>}, {pipeline_mode = #tpu.pipeline_mode<synchronous>, transform_indices = @transform_10, window_bounds = array<i64: 1, 32>}, {pipeline_mode = #tpu.pipeline_mode<synchronous>, transform_indices = @transform_11, window_bounds = array<i64: 32, 128>}, {pipeline_mode = #tpu.pipeline_mode<synchronous>, transform_indices = @transform_12, window_bounds = array<i64: 1, 128>}, {pipeline_mode = #tpu.pipeline_mode<synchronous>, transform_indices = @transform_13, window_bounds = array<i64: 128, 32>}, {pipeline_mode = #tpu.pipeline_mode<synchronous>, transform_indices = @transform_14, window_bounds = array<i64: 1, 32>}, {pipeline_mode = #tpu.pipeline_mode<synchronous>, transform_indices = @transform_15, window_bounds = array<i64: 1, 32>}, {pipeline_mode = #tpu.pipeline_mode<synchronous>, transform_indices = @transform_16, window_bounds = array<i64: 1, 32>}, {transform_indices = @transform_17, window_bounds = array<i64: 1, 8, 32>}]} {
    %c0_i32 = arith.constant 0 : i32
    %0 = arith.cmpi eq, %arg1, %c0_i32 : i32
    %1 = arith.extui %0 : i1 to i32
    %c0_i32_0 = arith.constant 0 : i32
    %2 = arith.cmpi ne, %1, %c0_i32_0 : i32
    scf.if %2 {
      %c0_61 = arith.constant 0 : index
      %c0_62 = arith.constant 0 : index
      %c0_63 = arith.constant 0 : index
      %109 = vector.load %arg3[%c0_61, %c0_62, %c0_63] : memref<1x8x32xbf16, #tpu.memory_space<vmem>>, vector<1x8x32xbf16>
      %110 = vector.shape_cast %109 : vector<1x8x32xbf16> to vector<8x32xbf16>
      %c0_64 = arith.constant 0 : index
      %c0_65 = arith.constant 0 : index
      %111 = vector.load %arg7[%c0_64, %c0_65] : memref<32x64xbf16, #tpu.memory_space<vmem>>, vector<32x64xbf16>
      %cst_66 = arith.constant dense<0.000000e+00> : vector<8x64xf32>
      %112 = tpu.matmul %110, %111, %cst_66 {dimension_numbers = #tpu.dot_dimension_numbers<[1], [0], [0], [1], [0, 0, 1, 1], [], []>} : vector<8x32xbf16>, vector<32x64xbf16>, vector<8x64xf32> -> vector<8x64xf32>
      %c0_67 = arith.constant 0 : index
      %c0_68 = arith.constant 0 : index
      %113 = vector.load %arg8[%c0_67, %c0_68] : memref<1x64xf32, #tpu.memory_space<vmem>>, vector<1x64xf32>
      %114 = vector.broadcast %113 : vector<1x64xf32> to vector<8x64xf32>
      %115 = arith.addf %112, %114 : vector<8x64xf32>
      %116 = vector.extract_strided_slice %115 {offsets = [0, 0], sizes = [8, 32], strides = [1, 1]} : vector<8x64xf32> to vector<8x32xf32>
      %117 = vector.extract_strided_slice %115 {offsets = [0, 32], sizes = [8, 32], strides = [1, 1]} : vector<8x64xf32> to vector<8x32xf32>
      %118 = vector.shape_cast %116 : vector<8x32xf32> to vector<8x4x8xf32>
      %119 = tpu.transpose %118, [1, 0, 2] : vector<8x4x8xf32> -> vector<4x8x8xf32>
      %120 = arith.truncf %119 : vector<4x8x8xf32> to vector<4x8x8xbf16>
      %c0_69 = arith.constant 0 : index
      %c0_70 = arith.constant 0 : index
      %c0_71 = arith.constant 0 : index
      %121 = vector.load %arg20[%c0_69, %c0_70, %c0_71] : memref<4x8x8xbf16, #tpu.memory_space<vmem>>, vector<4x8x8xbf16>
      tpu.vector_store %arg20[%c0_69, %c0_70, %c0_71], %120 {strides = array<i32>} : memref<4x8x8xbf16, #tpu.memory_space<vmem>>, vector<4x8x8xbf16>,
      %122 = vector.shape_cast %117 : vector<8x32xf32> to vector<8x4x8xf32>
      %123 = tpu.transpose %122, [1, 0, 2] : vector<8x4x8xf32> -> vector<4x8x8xf32>
      %124 = arith.truncf %123 : vector<4x8x8xf32> to vector<4x8x8xbf16>
      %c0_72 = arith.constant 0 : index
      %c0_73 = arith.constant 0 : index
      %c0_74 = arith.constant 0 : index
      %125 = vector.load %arg21[%c0_72, %c0_73, %c0_74] : memref<4x8x8xbf16, #tpu.memory_space<vmem>>, vector<4x8x8xbf16>
      tpu.vector_store %arg21[%c0_72, %c0_73, %c0_74], %124 {strides = array<i32>} : memref<4x8x8xbf16, #tpu.memory_space<vmem>>, vector<4x8x8xbf16>,
    } else {
    }
    %c0 = arith.constant 0 : index
    %c0_1 = arith.constant 0 : index
    %c0_2 = arith.constant 0 : index
    %3 = vector.load %arg2[%c0, %c0_1, %c0_2] : memref<1x8x32xbf16, #tpu.memory_space<vmem>>, vector<1x8x32xbf16>
    %4 = vector.shape_cast %3 : vector<1x8x32xbf16> to vector<8x32xbf16>
    %5 = arith.extf %4 : vector<8x32xbf16> to vector<8x32xf32>
    %c0_3 = arith.constant 0 : index
    %c0_4 = arith.constant 0 : index
    %6 = vector.load %arg5[%c0_3, %c0_4] : memref<32x32xbf16, #tpu.memory_space<vmem>>, vector<32x32xbf16>
    %cst = arith.constant dense<0.000000e+00> : vector<8x32xf32>
    %7 = tpu.matmul %4, %6, %cst {dimension_numbers = #tpu.dot_dimension_numbers<[1], [0], [0], [1], [0, 0, 1, 1], [], []>} : vector<8x32xbf16>, vector<32x32xbf16>, vector<8x32xf32> -> vector<8x32xf32>
    %c0_5 = arith.constant 0 : index
    %c0_6 = arith.constant 0 : index
    %8 = vector.load %arg6[%c0_5, %c0_6] : memref<1x32xf32, #tpu.memory_space<vmem>>, vector<1x32xf32>
    %9 = vector.broadcast %8 : vector<1x32xf32> to vector<8x32xf32>
    %10 = arith.addf %7, %9 : vector<8x32xf32>
    %11 = vector.shape_cast %10 : vector<8x32xf32> to vector<8x4x8xf32>
    %12 = tpu.transpose %11, [1, 0, 2] : vector<8x4x8xf32> -> vector<4x8x8xf32>
    %13 = arith.truncf %12 : vector<4x8x8xf32> to vector<4x8x8xbf16>
    %c0_7 = arith.constant 0 : index
    %c0_8 = arith.constant 0 : index
    %c0_9 = arith.constant 0 : index
    %14 = vector.load %arg20[%c0_7, %c0_8, %c0_9] : memref<4x8x8xbf16, #tpu.memory_space<vmem>>, vector<4x8x8xbf16>
    "tpu.trace_start"() <{level = 10 : i32, message = "hqd,hkd->hqk"}> : () -> ()
    %cst_10 = arith.constant dense<0.000000e+00> : vector<4x8x8xf32>
    %15 = tpu.matmul %13, %14, %cst_10 {dimension_numbers = #tpu.dot_dimension_numbers<[2], [2], [1], [1], [0, 0, 0, 1, 1, 1], [0], [0]>} : vector<4x8x8xbf16>, vector<4x8x8xbf16>, vector<4x8x8xf32> -> vector<4x8x8xf32>
    "tpu.trace_stop"() : () -> ()
    %c0_11 = arith.constant 0 : index
    %c0_12 = arith.constant 0 : index
    %c0_13 = arith.constant 0 : index
    %16 = vector.load %arg4[%c0_11, %c0_12, %c0_13] : memref<1x1x8xf32, #tpu.memory_space<vmem>>, vector<1x1x8xf32>
    %17 = vector.shape_cast %16 : vector<1x1x8xf32> to vector<1x8xf32>
    %cst_14 = arith.constant 1.000000e+00 : f32
    %18 = vector.broadcast %cst_14 : f32 to vector<1x8xf32>
    %19 = arith.subf %17, %18 : vector<1x8xf32>
    %cst_15 = arith.constant 1.000000e+09 : f32
    %20 = vector.broadcast %cst_15 : f32 to vector<1x8xf32>
    %21 = arith.mulf %19, %20 : vector<1x8xf32>
    %22 = vector.shape_cast %21 : vector<1x8xf32> to vector<1x1x8xf32>
    %23 = vector.broadcast %22 : vector<1x1x8xf32> to vector<4x8x8xf32>
    %24 = arith.addf %15, %23 : vector<4x8x8xf32>
    %cst_16 = arith.constant dense<0xFF800000> : vector<4x8xf32>
    %25 = vector.multi_reduction <maximumf>, %24, %cst_16 [2] : vector<4x8x8xf32> to vector<4x8xf32>
    %26 = vector.shape_cast %25 : vector<4x8xf32> to vector<4x8x1xf32>
    %27 = vector.broadcast %26 : vector<4x8x1xf32> to vector<4x8x8xf32>
    %28 = arith.subf %24, %27 : vector<4x8x8xf32>
    %29 = math.exp %28 : vector<4x8x8xf32>
    %cst_17 = arith.constant dense<0.000000e+00> : vector<4x8xf32>
    %30 = vector.multi_reduction <add>, %29, %cst_17 [2] : vector<4x8x8xf32> to vector<4x8xf32>
    %31 = vector.shape_cast %30 : vector<4x8xf32> to vector<4x8x1xf32>
    %32 = tpu.reciprocal %31 {approx = true} : vector<4x8x1xf32> -> vector<4x8x1xf32>
    %33 = vector.broadcast %32 : vector<4x8x1xf32> to vector<4x8x8xf32>
    %34 = arith.mulf %29, %33 : vector<4x8x8xf32>
    %35 = arith.truncf %34 : vector<4x8x8xf32> to vector<4x8x8xbf16>
    %c0_18 = arith.constant 0 : index
    %c0_19 = arith.constant 0 : index
    %c0_20 = arith.constant 0 : index
    %36 = vector.load %arg21[%c0_18, %c0_19, %c0_20] : memref<4x8x8xbf16, #tpu.memory_space<vmem>>, vector<4x8x8xbf16>
    "tpu.trace_start"() <{level = 10 : i32, message = "hqk,hkd->hqd"}> : () -> ()
    %cst_21 = arith.constant dense<0.000000e+00> : vector<4x8x8xf32>
    %37 = tpu.matmul %35, %36, %cst_21 {dimension_numbers = #tpu.dot_dimension_numbers<[2], [1], [1], [2], [0, 0, 0, 1, 1, 2], [0], [0]>} : vector<4x8x8xbf16>, vector<4x8x8xbf16>, vector<4x8x8xf32> -> vector<4x8x8xf32>
    "tpu.trace_stop"() : () -> ()
    %38 = arith.truncf %37 : vector<4x8x8xf32> to vector<4x8x8xbf16>
    %c0_22 = arith.constant 0 : index
    %c0_23 = arith.constant 0 : index
    %c0_24 = arith.constant 0 : index
    %39 = vector.load %arg9[%c0_22, %c0_23, %c0_24] : memref<4x8x32xbf16, #tpu.memory_space<vmem>>, vector<4x8x32xbf16>
    "tpu.trace_start"() <{level = 10 : i32, message = "hqd,hde->hqe"}> : () -> ()
    %cst_25 = arith.constant dense<0.000000e+00> : vector<4x8x32xf32>
    %40 = tpu.matmul %38, %39, %cst_25 {dimension_numbers = #tpu.dot_dimension_numbers<[2], [1], [1], [2], [0, 0, 0, 1, 1, 2], [0], [0]>} : vector<4x8x8xbf16>, vector<4x8x32xbf16>, vector<4x8x32xf32> -> vector<4x8x32xf32>
    "tpu.trace_stop"() : () -> ()
    %cst_26 = arith.constant dense<0.000000e+00> : vector<8x32xf32>
    %41 = vector.multi_reduction <add>, %40, %cst_26 [0] : vector<4x8x32xf32> to vector<8x32xf32>
    %c0_27 = arith.constant 0 : index
    %c0_28 = arith.constant 0 : index
    %42 = vector.load %arg10[%c0_27, %c0_28] : memref<1x32xf32, #tpu.memory_space<vmem>>, vector<1x32xf32>
    %43 = vector.broadcast %42 : vector<1x32xf32> to vector<8x32xf32>
    %44 = arith.addf %41, %43 : vector<8x32xf32>
    %45 = arith.addf %44, %5 : vector<8x32xf32>
    %c0_29 = arith.constant 0 : index
    %c0_30 = arith.constant 0 : index
    %46 = vector.load %arg11[%c0_29, %c0_30] : memref<1x32xf32, #tpu.memory_space<vmem>>, vector<1x32xf32>
    %c0_31 = arith.constant 0 : index
    %c0_32 = arith.constant 0 : index
    %47 = vector.load %arg12[%c0_31, %c0_32] : memref<1x32xf32, #tpu.memory_space<vmem>>, vector<1x32xf32>
    %cst_33 = arith.constant dense<0.000000e+00> : vector<8xf32>
    %48 = vector.multi_reduction <add>, %45, %cst_33 [1] : vector<8x32xf32> to vector<8xf32>
    %49 = vector.shape_cast %48 : vector<8xf32> to vector<8x1xf32>
    %cst_34 = arith.constant 3.200000e+01 : f32
    %50 = vector.broadcast %cst_34 : f32 to vector<8x1xf32>
    %51 = arith.divf %49, %50 : vector<8x1xf32>
    %52 = vector.broadcast %51 : vector<8x1xf32> to vector<8x32xf32>
    %53 = arith.subf %45, %52 : vector<8x32xf32>
    %54 = arith.mulf %53, %53 : vector<8x32xf32>
    %cst_35 = arith.constant dense<0.000000e+00> : vector<8xf32>
    %55 = vector.multi_reduction <add>, %54, %cst_35 [1] : vector<8x32xf32> to vector<8xf32>
    %56 = vector.shape_cast %55 : vector<8xf32> to vector<8x1xf32>
    %cst_36 = arith.constant 3.200000e+01 : f32
    %57 = vector.broadcast %cst_36 : f32 to vector<8x1xf32>
    %58 = arith.divf %56, %57 : vector<8x1xf32>
    %cst_37 = arith.constant 9.99999974E-6 : f32
    %59 = vector.broadcast %cst_37 : f32 to vector<8x1xf32>
    %60 = arith.addf %58, %59 : vector<8x1xf32>
    %61 = math.rsqrt %60 : vector<8x1xf32>
    %62 = vector.broadcast %61 : vector<8x1xf32> to vector<8x32xf32>
    %63 = arith.mulf %53, %62 : vector<8x32xf32>
    %64 = vector.broadcast %46 : vector<1x32xf32> to vector<8x32xf32>
    %65 = arith.mulf %63, %64 : vector<8x32xf32>
    %66 = vector.broadcast %47 : vector<1x32xf32> to vector<8x32xf32>
    %67 = arith.addf %65, %66 : vector<8x32xf32>
    %68 = arith.truncf %67 : vector<8x32xf32> to vector<8x32xbf16>
    %c0_38 = arith.constant 0 : index
    %c0_39 = arith.constant 0 : index
    %69 = vector.load %arg13[%c0_38, %c0_39] : memref<32x128xbf16, #tpu.memory_space<vmem>>, vector<32x128xbf16>
    %cst_40 = arith.constant dense<0.000000e+00> : vector<8x128xf32>
    %70 = tpu.matmul %68, %69, %cst_40 {dimension_numbers = #tpu.dot_dimension_numbers<[1], [0], [0], [1], [0, 0, 1, 1], [], []>} : vector<8x32xbf16>, vector<32x128xbf16>, vector<8x128xf32> -> vector<8x128xf32>
    %c0_41 = arith.constant 0 : index
    %c0_42 = arith.constant 0 : index
    %71 = vector.load %arg14[%c0_41, %c0_42] : memref<1x128xf32, #tpu.memory_space<vmem>>, vector<1x128xf32>
    %72 = vector.broadcast %71 : vector<1x128xf32> to vector<8x128xf32>
    %73 = arith.addf %70, %72 : vector<8x128xf32>
    %cst_43 = arith.constant 0.000000e+00 : f32
    %74 = vector.broadcast %cst_43 : f32 to vector<8x128xf32>
    %75 = arith.maximumf %73, %74 : vector<8x128xf32>
    %76 = arith.truncf %75 : vector<8x128xf32> to vector<8x128xbf16>
    %c0_44 = arith.constant 0 : index
    %c0_45 = arith.constant 0 : index
    %77 = vector.load %arg15[%c0_44, %c0_45] : memref<128x32xbf16, #tpu.memory_space<vmem>>, vector<128x32xbf16>
    %cst_46 = arith.constant dense<0.000000e+00> : vector<8x32xf32>
    %78 = tpu.matmul %76, %77, %cst_46 {dimension_numbers = #tpu.dot_dimension_numbers<[1], [0], [0], [1], [0, 0, 1, 1], [], []>} : vector<8x128xbf16>, vector<128x32xbf16>, vector<8x32xf32> -> vector<8x32xf32>
    %c0_47 = arith.constant 0 : index
    %c0_48 = arith.constant 0 : index
    %79 = vector.load %arg16[%c0_47, %c0_48] : memref<1x32xf32, #tpu.memory_space<vmem>>, vector<1x32xf32>
    %80 = vector.broadcast %79 : vector<1x32xf32> to vector<8x32xf32>
    %81 = arith.addf %78, %80 : vector<8x32xf32>
    %82 = arith.addf %81, %67 : vector<8x32xf32>
    %c0_49 = arith.constant 0 : index
    %c0_50 = arith.constant 0 : index
    %83 = vector.load %arg17[%c0_49, %c0_50] : memref<1x32xf32, #tpu.memory_space<vmem>>, vector<1x32xf32>
    %c0_51 = arith.constant 0 : index
    %c0_52 = arith.constant 0 : index
    %84 = vector.load %arg18[%c0_51, %c0_52] : memref<1x32xf32, #tpu.memory_space<vmem>>, vector<1x32xf32>
    %cst_53 = arith.constant dense<0.000000e+00> : vector<8xf32>
    %85 = vector.multi_reduction <add>, %82, %cst_53 [1] : vector<8x32xf32> to vector<8xf32>
    %86 = vector.shape_cast %85 : vector<8xf32> to vector<8x1xf32>
    %cst_54 = arith.constant 3.200000e+01 : f32
    %87 = vector.broadcast %cst_54 : f32 to vector<8x1xf32>
    %88 = arith.divf %86, %87 : vector<8x1xf32>
    %89 = vector.broadcast %88 : vector<8x1xf32> to vector<8x32xf32>
    %90 = arith.subf %82, %89 : vector<8x32xf32>
    %91 = arith.mulf %90, %90 : vector<8x32xf32>
    %cst_55 = arith.constant dense<0.000000e+00> : vector<8xf32>
    %92 = vector.multi_reduction <add>, %91, %cst_55 [1] : vector<8x32xf32> to vector<8xf32>
    %93 = vector.shape_cast %92 : vector<8xf32> to vector<8x1xf32>
    %cst_56 = arith.constant 3.200000e+01 : f32
    %94 = vector.broadcast %cst_56 : f32 to vector<8x1xf32>
    %95 = arith.divf %93, %94 : vector<8x1xf32>
    %cst_57 = arith.constant 9.99999974E-6 : f32
    %96 = vector.broadcast %cst_57 : f32 to vector<8x1xf32>
    %97 = arith.addf %95, %96 : vector<8x1xf32>
    %98 = math.rsqrt %97 : vector<8x1xf32>
    %99 = vector.broadcast %98 : vector<8x1xf32> to vector<8x32xf32>
    %100 = arith.mulf %90, %99 : vector<8x32xf32>
    %101 = vector.broadcast %83 : vector<1x32xf32> to vector<8x32xf32>
    %102 = arith.mulf %100, %101 : vector<8x32xf32>
    %103 = vector.broadcast %84 : vector<1x32xf32> to vector<8x32xf32>
    %104 = arith.addf %102, %103 : vector<8x32xf32>
    %105 = arith.truncf %104 : vector<8x32xf32> to vector<8x32xbf16>
    %c0_58 = arith.constant 0 : index
    %c0_59 = arith.constant 0 : index
    %c0_60 = arith.constant 0 : index
    %106 = vector.load %arg19[%c0_58, %c0_59, %c0_60] : memref<1x8x32xbf16, #tpu.memory_space<vmem>>, vector<1x8x32xbf16>
    %107 = vector.shape_cast %106 : vector<1x8x32xbf16> to vector<8x32xbf16>
    %108 = vector.shape_cast %105 : vector<8x32xbf16> to vector<1x8x32xbf16>
    tpu.vector_store %arg19[%c0_58, %c0_59, %c0_60], %108 {strides = array<i32>} : memref<1x8x32xbf16, #tpu.memory_space<vmem>>, vector<1x8x32xbf16>,
    return
  }
  func.func @transform_0(%arg0: i32, %arg1: i32) -> (i32, i32, i32) {
    %c0_i32 = arith.constant 0 : i32
    %c0_i32_0 = arith.constant 0 : i32
    return %arg0, %arg1, %c0_i32 : i32, i32, i32
  }
  func.func @transform_1(%arg0: i32, %arg1: i32) -> (i32, i32, i32) {
    %c0_i32 = arith.constant 0 : i32
    %c0_i32_0 = arith.constant 0 : i32
    %c0_i32_1 = arith.constant 0 : i32
    return %arg0, %c0_i32, %c0_i32_0 : i32, i32, i32
  }
  func.func @transform_2(%arg0: i32, %arg1: i32) -> (i32, i32, i32) {
    %c0_i32 = arith.constant 0 : i32
    %c0_i32_0 = arith.constant 0 : i32
    %c0_i32_1 = arith.constant 0 : i32
    return %arg0, %c0_i32, %c0_i32_0 : i32, i32, i32
  }
  func.func @transform_3(%arg0: i32, %arg1: i32) -> (i32, i32) {
    %c0_i32 = arith.constant 0 : i32
    %c0_i32_0 = arith.constant 0 : i32
    %c0_i32_1 = arith.constant 0 : i32
    return %c0_i32, %c0_i32_0 : i32, i32
  }
  func.func @transform_4(%arg0: i32, %arg1: i32) -> (i32, i32) {
    %c0_i32 = arith.constant 0 : i32
    %c0_i32_0 = arith.constant 0 : i32
    %c0_i32_1 = arith.constant 0 : i32
    return %c0_i32, %c0_i32_0 : i32, i32
  }
  func.func @transform_5(%arg0: i32, %arg1: i32) -> (i32, i32) {
    %c0_i32 = arith.constant 0 : i32
    %c0_i32_0 = arith.constant 0 : i32
    %c0_i32_1 = arith.constant 0 : i32
    return %c0_i32, %c0_i32_0 : i32, i32
  }
  func.func @transform_6(%arg0: i32, %arg1: i32) -> (i32, i32) {
    %c0_i32 = arith.constant 0 : i32
    %c0_i32_0 = arith.constant 0 : i32
    %c0_i32_1 = arith.constant 0 : i32
    return %c0_i32, %c0_i32_0 : i32, i32
  }
  func.func @transform_7(%arg0: i32, %arg1: i32) -> (i32, i32, i32) {
    %c0_i32 = arith.constant 0 : i32
    %c0_i32_0 = arith.constant 0 : i32
    %c0_i32_1 = arith.constant 0 : i32
    %c0_i32_2 = arith.constant 0 : i32
    return %c0_i32, %c0_i32_0, %c0_i32_1 : i32, i32, i32
  }
  func.func @transform_8(%arg0: i32, %arg1: i32) -> (i32, i32) {
    %c0_i32 = arith.constant 0 : i32
    %c0_i32_0 = arith.constant 0 : i32
    %c0_i32_1 = arith.constant 0 : i32
    return %c0_i32, %c0_i32_0 : i32, i32
  }
  func.func @transform_9(%arg0: i32, %arg1: i32) -> (i32, i32) {
    %c0_i32 = arith.constant 0 : i32
    %c0_i32_0 = arith.constant 0 : i32
    %c0_i32_1 = arith.constant 0 : i32
    return %c0_i32, %c0_i32_0 : i32, i32
  }
  func.func @transform_10(%arg0: i32, %arg1: i32) -> (i32, i32) {
    %c0_i32 = arith.constant 0 : i32
    %c0_i32_0 = arith.constant 0 : i32
    %c0_i32_1 = arith.constant 0 : i32
    return %c0_i32, %c0_i32_0 : i32, i32
  }
  func.func @transform_11(%arg0: i32, %arg1: i32) -> (i32, i32) {
    %c0_i32 = arith.constant 0 : i32
    %c0_i32_0 = arith.constant 0 : i32
    %c0_i32_1 = arith.constant 0 : i32
    return %c0_i32, %c0_i32_0 : i32, i32
  }
  func.func @transform_12(%arg0: i32, %arg1: i32) -> (i32, i32) {
    %c0_i32 = arith.constant 0 : i32
    %c0_i32_0 = arith.constant 0 : i32
    %c0_i32_1 = arith.constant 0 : i32
    return %c0_i32, %c0_i32_0 : i32, i32
  }
  func.func @transform_13(%arg0: i32, %arg1: i32) -> (i32, i32) {
    %c0_i32 = arith.constant 0 : i32
    %c0_i32_0 = arith.constant 0 : i32
    %c0_i32_1 = arith.constant 0 : i32
    return %c0_i32, %c0_i32_0 : i32, i32
  }
  func.func @transform_14(%arg0: i32, %arg1: i32) -> (i32, i32) {
    %c0_i32 = arith.constant 0 : i32
    %c0_i32_0 = arith.constant 0 : i32
    %c0_i32_1 = arith.constant 0 : i32
    return %c0_i32, %c0_i32_0 : i32, i32
  }
  func.func @transform_15(%arg0: i32, %arg1: i32) -> (i32, i32) {
    %c0_i32 = arith.constant 0 : i32
    %c0_i32_0 = arith.constant 0 : i32
    %c0_i32_1 = arith.constant 0 : i32
    return %c0_i32, %c0_i32_0 : i32, i32
  }
  func.func @transform_16(%arg0: i32, %arg1: i32) -> (i32, i32) {
    %c0_i32 = arith.constant 0 : i32
    %c0_i32_0 = arith.constant 0 : i32
    %c0_i32_1 = arith.constant 0 : i32
    return %c0_i32, %c0_i32_0 : i32, i32
  }
  func.func @transform_17(%arg0: i32, %arg1: i32) -> (i32, i32, i32) {
    %c0_i32 = arith.constant 0 : i32
    %c0_i32_0 = arith.constant 0 : i32
    return %arg0, %arg1, %c0_i32 : i32, i32, i32
  }
}

</mosaic_0001>

<bundles_post_ra>
// kernel: tpu_custom_call.1
= control target key start
LH: loop header
LB: loop body
LE: loop exit
PB: predicated region body
PF: predicated region fallthrough
CT: control target
= control target key end

     0   :  { %s3168_s0 = inlined_call_operand.vmem [shape: bf16[2,8,32], index: 0, kind: input, shape index: {}]   ;;  %s3169_s1 = inlined_call_operand.vmem [shape: bf16[2,8,32], index: 1, kind: input, shape index: {}]   ;;  %s3170_s2 = inlined_call_operand.vmem [shape: f32[2,1,8], index: 2, kind: input, shape index: {}]   ;;  %s3171_s3 = inlined_call_operand.vmem [shape: bf16[32,32], index: 3, kind: input, shape index: {}]   ;;  %s3172_s4 = inlined_call_operand.vmem [shape: f32[1,32], index: 4, kind: input, shape index: {}]   ;;  %s3173_s5 = inlined_call_operand.vmem [shape: bf16[32,64], index: 5, kind: input, shape index: {}]   ;;  %s3174_s6 = inlined_call_operand.vmem [shape: f32[1,64], index: 6, kind: input, shape index: {}]   ;;  %s3175_s7 = inlined_call_operand.vmem [shape: bf16[4,8,32], index: 7, kind: input, shape index: {}]   ;;  %s3176_s8 = inlined_call_operand.vmem [shape: f32[1,32], index: 8, kind: input, shape index: {}]   ;;  %s3177_s9 = inlined_call_operand.vmem [shape: f32[1,32], index: 9, kind: input, shape index: {}]   ;;  %s3178_s10 = inlined_call_operand.vmem [shape: f32[1,32], index: 10, kind: input, shape index: {}]   ;;  %s3179_s11 = inlined_call_operand.vmem [shape: bf16[32,128], index: 11, kind: input, shape index: {}]   ;;  %s3180_s12 = inlined_call_operand.hbm [shape: f32[1,128], index: 12, kind: input, shape index: {}]   ;;  %s3181_s13 = inlined_call_operand.vmem [shape: bf16[128,32], index: 13, kind: input, shape index: {}]   ;;  %s3182_s14 = inlined_call_operand.vmem [shape: f32[1,32], index: 14, kind: input, shape index: {}]   ;;  %s3183_s15 = inlined_call_operand.vmem [shape: f32[1,32], index: 15, kind: input, shape index: {}]   ;;  %s3184_s16 = inlined_call_operand.vmem [shape: f32[1,32], index: 16, kind: input, shape index: {}]   ;;  %s3185_s17 = inlined_call_operand.hbm [shape: bf16[2,8,32], index: 17, kind: output, shape index: {}]  }
   0x1   :  { %3191 = sst [smem:[#allocation16_spill]] %s3168_s0 }
   0x2   :  { %3192 = sst [smem:[#allocation17_spill]] %s3169_s1 }
   0x3   :  { %3193 = sst [smem:[#allocation18_spill]] %s3180_s12 }
   0x4   :  { %22 = vsyncpa [#allocation5], 0 }
   0x5   :  { %23 = vsyncpa [#allocation6], 0 }
   0x6   :  { %25 = vsyncpa [#allocation6 + $0x1], 0  ;;  %s2754_s24 = smov 0   ;;  %s2756_s25 = smov 0  }
   0x7   :  { %s2758_s26 = smov 0   ;;  %s2760_s27 = smov 0  }
   0x8   :  { %s2762_s28 = smov 0   ;;  %s2764_s29 = smov 0  }
   0x9 LB: > { %3194 = sst [smem:[#allocation10_spill]] %s2632_s24  ;;  %s2221_s0 = sadd.s32 4294967295, %s2652_s29   ;;  %s2652_s29 = sphi %s2764_s29, %s31_s29   ;;  %s2648_s28 = sphi %s2762_s28, %s3212_s28   ;;  %s2644_s27 = sphi %s2760_s27, %s3211_s27   ;;  %s2640_s26 = sphi %s2758_s26, %s3215_s26   ;;  %s2636_s25 = sphi %s2756_s25, %s3214_s25   ;;  %s2632_s24 = sphi %s2754_s24, %s3213_s24  }
   0xa   : > { %3195 = sst [smem:[#allocation11_spill]] %s2640_s26  ;;  %s2222_s30 = sadd.s32 4294967294, %s2652_s29  }
   0xb   : > { %3196 = sst [smem:[#allocation12_spill]] %s2648_s28  ;;  %s43_s18 = sadd.s32 1, %s2648_s28 }
   0xc   : > { %s426_s19 = sadd.s32 1, %s2640_s26  ;;  %p45_p0 = scmp.ge.s32.totalorder %s43_s18, 2 }
   0xd   : > { %p436_p1 = scmp.ne.s32.totalorder %s2640_s26, %s2636_s25  ;;  %p437_p2 = scmp.eq.s32.totalorder %s2221_s0, 1 }
   0xe   : > { %p442_p3 = scmp.ne.s32.totalorder %s2636_s25, %s2632_s24  ;;  %s3217_s18 = smov (%p45_p0, %s43_s18), 0 }
   0xf   : > { %3197 = sst [smem:[#allocation13_spill]] %s3217_s18  ;;  %p2794_p4 = por %p437_p2, %p436_p1 }
  0x10   : > { %p443_p5 = scmp.eq.s32.totalorder %s2222_s30, 1  ;;  %s421_s20 = ssub.s32 %s2648_s28, %s3217_s18 }
  0x11   : > { %p2223_p6 = scmp.ge.s32.totalorder %s2652_s29, 1  ;;  %p424_p7 = scmp.eq.s32.totalorder %s421_s20, 0 }
  0x12   : > { %p2801_p8 = por %p443_p5, %p442_p3  ;;  %p450_p9 = scmp.lt.s32.totalorder %s2652_s29, 3 }
  0x13   : > { %s2807_s22 = scalar_select %p424_p7, %s2640_s26, %s426_s19  }
  0x14   : > { %s3199_s21 = scalar_select %p2801_p8, 1, 0 }
  0x15   : > { %3201 = sst [smem:[#allocation15_spill]] %s2807_s22  ;;  %p2809_p10 = pnand %p2223_p6, %p450_p9 }
  0x16   : > { %3200 = sst [smem:[#allocation14_spill]] %s3199_s21  ;;  %p2813_p11 = scmp.eq.s32.totalorder %s2221_s0, 0 }
  0x17   : > { %p2444_p12 = pneg %p2809_p10  ;;  %s2654_s30 = smov [#allocation4]  }
  0x18   : > { %s490_s20 = sshll.u32 %s2654_s30, 4  ;;  %s491_s20 = int_to_ptr.vmem [resolvable:$true] %s490_s20 }
  0x19   : > { %p2445_p13 = pnand %p2813_p11, %p2444_p12  ;;  %s2557_s19 = scalar_lea.vmem %s491_s20, 16 }
  0x1a   : > { %p2558_p1 = scmp.ne.s32.totalorder %s491_s20, %s2557_s19  ;;  %s2564_s18 = scalar_lea.vmem %s491_s20, 32 }
  0x1b   : > { %p2548_p0 = pneg %p2445_p13  ;;  %p2565_p5 = scmp.lt.s32.totalorder %s491_s20, %s491_s20 }
  0x1c   : > { %p2566_p6 = scmp.lt.s32.totalorder %s2564_s18, %s2557_s19 }
  0x1d   : > { %p2560_p2 = pnand %p2558_p1, %p2548_p0 }
  0x1e   : > { %p2567_p7 = por %p2566_p6, %p2565_p5 }
  0x1f   : > { %p2561_p3 = pneg %p2560_p2 }
  0x21   : > { %p2568_p9 = pnand %p2567_p7, %p2561_p3 }
  0x23   : > { %2571 = shalt.err (!%p2568_p9)
}
  0x24   : > { %s3204_s12 = sld [smem:[#allocation18_spill]] }
  0x26   : > { %538 = sbr.rel (%p2809_p10) target bundleno = 2350 (0x92e), region = 88 }
  0x2a   : > { %2447 = dma.hbm_to_vmem [thread:$0]  (!%p2445_p13), %s3204_s12, 16, %s491_s20, [#allocation5]  }
  0x2b   : > { %2623 = dma.done.wait (%p2813_p11), [#allocation5], 16  }
  0x2c   : > { %2625 = vsyncadd (%p2813_p11), [#allocation5], 4294967280  ;;  %p599_p12 = scmp.lt.s32.totalorder %s2644_s27, 1  ;;  %v2655_v0 = vmov 0.0   ;;  %vm2656_vm0 = vmmov 0   ;;  %v2512_v1 = vld [vmem:[%s3173_s5 + $0x8] sm:$0xff]   ;;  %v701_v20 = vlaneseq }
  0x2d   : > { %2322 = vmatprep.subr.bf16.mxu0 %v2655_v0  ;;  %2326 = vmatprep.mubr.msk.bf16.mxu0 %vm2656_vm0, %v2655_v0  ;;  %s3205_s19 = sld [smem:[#allocation17_spill]]  ;;  %v2513_v2 = vld [vmem:[%s3173_s5] sm:$0xff]   ;;  %vm642_vm1 = vcmask 261120   ;;  %v2514_v4 = vld [vmem:[%s3171_s3 + $0x8] sm:$0xff]   ;;  %s2659_s23 = smov 112   ;;  %vm836_vm2 = vcmask 60416  }
  0x2e   : > { %s2835_s28 = scalar_select %p599_p12, %s2644_s27, 1  ;;  %2344 = vmatprep.subr.bf16.mxu1 %v2655_v0  ;;  %2346 = vmatprep.mubr.msk.bf16.mxu1 %vm2656_vm0, %v2655_v0  ;;  %v2515_v5 = vld [vmem:[%s3171_s3] sm:$0xff]   ;;  %v702_v22 = vshrl.u32 %v701_v20, 7  ;;  %v2660_v26 = vmov 1983009808   ;;  %vm1229_vm3 = vcmask 64512  }
  0x2f   : > { %2323 = vmatpush3.bf16.msra.mxu0 %v2512_v1  ;;  %s3206_s30 = sld [smem:[#allocation16_spill]]  ;;  %v2231_v7 = vld [vmem:[%s3174_s6] ss:$0 sm:$0xff]  ;;  %v699_v27 = vunpack.c.l.s4 %v2660_v26  ;;  %v2661_v28 = vmov 1934713408   ;;  %vm1469_vm4 = vcmask 1043456  }
  0x30   : > { %s2229_s24 = sshll.u32 %s2835_s28, 2  ;;  %2324 = vmatprep.subr.bf16.mxu0 %v2655_v0  ;;  %v2239_v13 = vld [vmem:[%s3172_s4] ss:$0 sm:$0xff]  ;;  %v1226_v24 = vsub.s32 0, %v702_v22  ;;  %v731_v29 = vunpack.c.l.s4 %v2661_v28  ;;  %s2277_s18 = sshll.u32 %s2644_s27, 6  ;;  %vm2100_vm5 = vcmask 257024  }
  0x31   : > { %v700_v30 = vunpack.c.0.s8 %v699_v27 }
  0x32   : > { %v732_v33 = vunpack.c.0.s8 %v731_v29 }
  0x33   : > { %s609_s0 = scalar_lea.vmem %s3205_s19, %s2229_s24  ;;  %2325 = vmatpush3.bf16.msra.mxu0 %v2513_v2  ;;  %s2658_s19 = smov 120   ;;  %v2893_v34 = vsub.s32 %v700_v30, %v702_v22 }
  0x34   : > { %v618_v3 = vld [vmem:[%s609_s0] sm:$0xf]  ;;  %2330 = vmatprep.subr.bf16.mxu0 %v2655_v0  ;;  %v2905_v40 = vsub.s32 %v732_v33, %v702_v22 }
  0x35   : > { %s605_s20 = scalar_lea.vmem %s3206_s30, %s2229_s24  ;;  %s2657_s24 = smov 104  }
  0x36   : > { %2327 = vmatmul.mubr.msk.bf16.vlgmr.msra.gmra.mxu0 %vm642_vm1, %v618_v3  ;;  %v2865_v6 = vld [vmem:[%s605_s20] sm:$0xf]  ;;  %s612_s30 = scalar_lea.vmem %s3170_s2, %s2835_s28  ;;  %s2662_s28 = smov 96  }
  0x37   : > { %2331 = vmatpush3.bf16.msra.mxu0 %v2514_v4  ;;  %2334 = vmatprep.mubr.msk.bf16.mxu0 %vm2656_vm0, %v2655_v0  ;;  %v1220_v19 = vld [vmem:[%s612_s30] sm:$0x1]  ;;  %s596_s20 = sand.u32 1, %s2636_s25  }
  0x38   : > { %2332 = vmatprep.subr.bf16.mxu0 %v2655_v0  ;;  %v2245_v21 = vadd.f32 -1.0, %v1220_v19  ;;  %s2228_s26 = sshll.u32 %s596_s20, 2  ;;  %s2103_s21 = scalar_lea.sflag [#allocation6], %s596_s20 }
  0x3a   : > { %v1222_v23 = vmul.f32 1e+09, %v2245_v21 }
  0x3b   : > { %2333 = vmatpush3.bf16.msra.mxu0 %v2515_v5 }
  0x3c   : > { %2338 = vmatprep.subr.bf16.mxu0 %v2655_v0  ;;  %v2887_v25 = vrot.slane %v1222_v23, %v1226_v24 }
  0x3e   : > { %2335 = vmatmul.mubr.msk.bf16.vlgmr.msra.gmra.mxu0 %vm642_vm1, %v2865_v6 }
  0x3f   : > { %2340 = vmatprep.mubr.msk.bf16.mxu0 %vm2656_vm0, %v2655_v0 }
  0xf6   : > { %v680_v8 = vpop.f32.mrf.mxu0 }
  0xf7   : > { %v2875_v9 = vadd.f32 %v2231_v7, %v680_v8 }
  0xf8   : > { %v2328_v10 = vpop.f32.mrf.mxu0 }
  0xf9   : > { %693 = vrot.lane.b32.xlu1 %v2875_v9, %s2657_s24  ;;  %687 = vrot.lane.b32.xlu0 %v2875_v9, %s2658_s19 }
  0xfa   : > { %v683_v11 = vpop.f32.mrf.mxu0 }
  0xfc   : > { %v2329_v12 = vpop.f32.mrf.mxu0 }
  0xfd   : > { %690 = vrot.lane.b32.xlu0 %v2875_v9, %s2659_s23 }
  0xfe   : > { %v1060_v14 = vpop.f32.mrf.mxu0 }
  0xff   : > { %v1061_v15 = vadd.f32 %v2239_v13, %v1060_v14 }
 0x100   : > { %v2336_v16 = vpop.f32.mrf.mxu0 }
 0x101   : > { %1070 = vrot.lane.b32.xlu0 %v1061_v15, %s2659_s23  ;;  %1067 = vrot.lane.b32.xlu1 %v1061_v15, %s2658_s19  ;;  %s598_s23 = scalar_lea.vmem [#allocation7], %s2228_s26  ;;  %s2663_s19 = smov [#allocation7]  }
 0x102   : > { %v1063_v17 = vpop.f32.mrf.mxu0  ;;  %s2117_s12 = sshll.u32 %s598_s23, 4  ;;  %s2576_s0 = sshll.u32 %s2663_s19, 4  ;;  %s2118_s12 = int_to_ptr.vmem [resolvable:$true] %s2117_s12  ;;  %s2577_s0 = int_to_ptr.vmem [resolvable:$false] %s2576_s0 }
 0x103   : > { %s2578_s27 = scalar_lea.vmem %s2577_s0, 128  ;;  %p2579_p0 = scmp.lt.s32.totalorder %s2118_s12, %s2577_s0 }
 0x104   : > { %v2337_v18 = vpop.f32.mrf.mxu0 }
 0x105   : > { %1073 = vrot.lane.b32.xlu1 %v1061_v15, %s2657_s24  ;;  %s2572_s24 = scalar_lea.vmem %s2118_s12, 64 }
 0x106   : > { %p2573_p10 = scmp.ne.s32.totalorder %s2118_s12, %s2572_s24  ;;  %p2580_p1 = scmp.lt.s32.totalorder %s2578_s27, %s2572_s24 }
 0x108   : > { %p2574_p11 = pnand %p2573_p10, %p2794_p4  ;;  %p2581_p2 = por %p2580_p1, %p2579_p0 }
 0x10a   : > { %p2575_p13 = pneg %p2574_p11 }
 0x10c   : > { %p2582_p3 = pnand %p2581_p2, %p2575_p13 }
 0x16b   : > { %v2889_v31 = vpop.permute.xlu1 %693  ;;  %v2891_v32 = vpop.permute.xlu0 %687 }
 0x16c   : > { %v712_v35 = vcombine.low %v2891_v32, %v2889_v31  ;;  %v713_v36 = vcombine.high %v2891_v32, %v2889_v31 }
 0x16e   : > { %v720_v41 = vrot.slane %v712_v35, %v2893_v34  ;;  %v727_v42 = vrot.slane %v713_v36, %v2893_v34 }
 0x16f   : > { %v2899_v37 = vpop.permute.xlu0 %690 }
 0x170   : > { %v696_v38 = vcombine.low %v2875_v9, %v2899_v37  ;;  %v697_v39 = vcombine.high %v2875_v9, %v2899_v37 }
 0x172   : > { %v704_v43 = vrot.slane %v696_v38, %v2893_v34  ;;  %v711_v44 = vrot.slane %v697_v39, %v2893_v34 }
 0x173   : > { %v1068_v45 = vpop.permute.xlu1 %1067  ;;  %v1071_v50 = vpop.permute.xlu0 %1070 }
 0x174   : > { %v728_v46 = vcombine.low %v704_v43, %v720_v41  ;;  %v729_v47 = vcombine.high %v704_v43, %v720_v41  ;;  %v744_v48 = vcombine.low %v711_v44, %v727_v42  ;;  %v745_v49 = vcombine.high %v711_v44, %v727_v42 }
 0x175   : > { %v1076_v55 = vcombine.low %v1061_v15, %v1071_v50  ;;  %v1077_v56 = vcombine.high %v1061_v15, %v1071_v50 }
 0x176   : > { %v736_v51 = vrot.slane %v728_v46, %v2905_v40  ;;  %v743_v52 = vrot.slane %v729_v47, %v2905_v40  ;;  %v752_v53 = vrot.slane %v744_v48, %v2905_v40  ;;  %v759_v54 = vrot.slane %v745_v49, %v2905_v40 }
 0x177   : > { %v1074_v57 = vpop.permute.xlu1 %1073  ;;  %v1084_v5 = vrot.slane %v1076_v55, %v2893_v34  ;;  %v1091_v7 = vrot.slane %v1077_v56, %v2893_v34 }
 0x178   : > { %v764_v58 = vcombine.low %v736_v51, %v743_v52  ;;  %v2235_v59 = vcombine.high %v736_v51, %v743_v52  ;;  %v780_v60 = vcombine.low %v752_v53, %v759_v54  ;;  %v2236_v61 = vcombine.high %v752_v53, %v759_v54 }
 0x179   : > { %v1092_v62 = vcombine.low %v1068_v45, %v1074_v57  ;;  %v1093_v63 = vcombine.high %v1068_v45, %v1074_v57 }
 0x17a   : > { %v771_v1 = vrot.slane %v764_v58, %v2893_v34  ;;  %v779_v2 = vrot.slane %v2235_v59, %v2893_v34  ;;  %v787_v3 = vrot.slane %v780_v60, %v2893_v34  ;;  %v795_v4 = vrot.slane %v2236_v61, %v2893_v34 }
 0x17b   : > { %v1100_v8 = vrot.slane %v1092_v62, %v2893_v34  ;;  %v1107_v10 = vrot.slane %v1093_v63, %v2893_v34 }
 0x17c   : > { %v796_v11 = vcombine.low %v771_v1, %v779_v2  ;;  %v797_v12 = vcombine.high %v771_v1, %v779_v2  ;;  %v812_v13 = vcombine.low %v787_v3, %v795_v4  ;;  %v813_v14 = vcombine.high %v787_v3, %v795_v4 }
 0x17d   : > { %v1108_v15 = vcombine.low %v1084_v5, %v1100_v8  ;;  %v1109_v16 = vcombine.high %v1084_v5, %v1100_v8  ;;  %v1124_v17 = vcombine.low %v1091_v7, %v1107_v10  ;;  %v1125_v18 = vcombine.high %v1091_v7, %v1107_v10 }
 0x17e   : > { %v804_v19 = vrot.slane %v796_v11, %v2905_v40  ;;  %v811_v20 = vrot.slane %v797_v12, %v2905_v40  ;;  %v820_v21 = vrot.slane %v812_v13, %v2905_v40  ;;  %v827_v22 = vrot.slane %v813_v14, %v2905_v40 }
 0x17f   : > { %v1116_v23 = vrot.slane %v1108_v15, %v2905_v40  ;;  %v1123_v24 = vrot.slane %v1109_v16, %v2905_v40  ;;  %v1132_v26 = vrot.slane %v1124_v17, %v2905_v40  ;;  %v1139_v27 = vrot.slane %v1125_v18, %v2905_v40 }
 0x180   : > { %v828_v28 = vcombine.low %v804_v19, %v820_v21  ;;  %v829_v29 = vcombine.high %v804_v19, %v820_v21  ;;  %v830_v30 = vcombine.low %v811_v20, %v827_v22  ;;  %v831_v33 = vcombine.high %v811_v20, %v827_v22 }
 0x181   : > { %v1144_v35 = vcombine.low %v1116_v23, %v1123_v24  ;;  %v2243_v36 = vcombine.high %v1116_v23, %v1123_v24  ;;  %v1160_v38 = vcombine.low %v1132_v26, %v1139_v27  ;;  %v2244_v39 = vcombine.high %v1132_v26, %v1139_v27 }
 0x182   : > { %v832_v41 = vpack.c.bf16 %v828_v28, %v828_v28  ;;  %v833_v42 = vpack.c.bf16 %v829_v29, %v829_v29  ;;  %v834_v43 = vpack.c.bf16 %v830_v30, %v830_v30  ;;  %v835_v44 = vpack.c.bf16 %v831_v33, %v831_v33 }
 0x183   : > { %v1151_v45 = vrot.slane %v1144_v35, %v2893_v34  ;;  %v1159_v46 = vrot.slane %v2243_v36, %v2893_v34  ;;  %v1167_v47 = vrot.slane %v1160_v38, %v2893_v34  ;;  %v1175_v48 = vrot.slane %v2244_v39, %v2893_v34 }
 0x184   : > { %837 = vst.msk [vmem:[#allocation2] sm:$0xf] %vm836_vm2, %v832_v41  ;;  %838 = vst.msk [vmem:[#allocation2 + $0x4] sm:$0xf] %vm836_vm2, %v833_v42 }
 0x185   : > { %839 = vst.msk [vmem:[#allocation2 + $0x8] sm:$0xf] %vm836_vm2, %v834_v43  ;;  %840 = vst.msk [vmem:[#allocation2 + $0xc] sm:$0xf] %vm836_vm2, %v835_v44  ;;  %v1176_v49 = vcombine.low %v1151_v45, %v1159_v46  ;;  %v1192_v50 = vcombine.low %v1167_v47, %v1175_v48  ;;  %v1177_v57 = vcombine.high %v1151_v45, %v1159_v46 }
 0x186   : > { %v1193_v58 = vcombine.high %v1167_v47, %v1175_v48 }
 0x187   : > { %v1184_v51 = vrot.slane %v1176_v49, %v2905_v40  ;;  %v1200_v52 = vrot.slane %v1192_v50, %v2905_v40  ;;  %v1191_v2 = vrot.slane %v1177_v57, %v2905_v40 }
 0x188   : > { %v1207_v3 = vrot.slane %v1193_v58, %v2905_v40 }
 0x189   : > { %v1208_v59 = vcombine.low %v1184_v51, %v1200_v52  ;;  %v1209_v60 = vcombine.high %v1184_v51, %v1200_v52 }
 0x18a   : > { %v1210_v7 = vcombine.low %v1191_v2, %v1207_v3  ;;  %v1211_v8 = vcombine.high %v1191_v2, %v1207_v3 }
 0x18b   : > { %v1216_v53 = vld [vmem:[#allocation2] sm:$0xf]  ;;  %v1217_v54 = vld [vmem:[#allocation2 + $0x4] sm:$0xf]  ;;  %v1212_v63 = vpack.c.bf16 %v1208_v59, %v1208_v59  ;;  %v1213_v1 = vpack.c.bf16 %v1209_v60, %v1209_v60 }
 0x18c   : > { %v1234_v55 = vsel %vm1229_vm3, %v1216_v53, 0  ;;  %v1280_v56 = vsel %vm1229_vm3, %v1217_v54, 0  ;;  %v1218_v61 = vld [vmem:[#allocation2 + $0x8] sm:$0xf]  ;;  %v1219_v62 = vld [vmem:[#allocation2 + $0xc] sm:$0xf]  ;;  %v1214_v10 = vpack.c.bf16 %v1210_v7, %v1210_v7  ;;  %v1215_v11 = vpack.c.bf16 %v1211_v8, %v1211_v8 }
 0x18d   : > { %2339 = vmatpush3.bf16.xpose.msra.mxu0 %v1234_v55  ;;  %2345 = vmatpush3.bf16.xpose.msra.mxu1 %v1280_v56  ;;  %v1326_v4 = vsel %vm1229_vm3, %v1218_v61, 0  ;;  %v1372_v5 = vsel %vm1229_vm3, %v1219_v62, 0 }
 0x18e   : > { %2350 = vmatprep.subr.bf16.mxu0 %v2655_v0  ;;  %2356 = vmatprep.subr.bf16.mxu1 %v2655_v0 }
 0x194   : > { %2341 = vmatmul.mubr.msk.bf16.vlgmr.msra.gmra.mxu0 %vm1229_vm3, %v1212_v63  ;;  %2347 = vmatmul.mubr.msk.bf16.vlgmr.msra.gmra.mxu1 %vm1229_vm3, %v1213_v1 }
 0x195   : > { %2351 = vmatpush3.bf16.xpose.msra.mxu0 %v1326_v4  ;;  %2357 = vmatpush3.bf16.xpose.msra.mxu1 %v1372_v5 }
 0x196   : > { %2352 = vmatprep.mubr.msk.bf16.mxu0 %vm2656_vm0, %v2655_v0  ;;  %2358 = vmatprep.mubr.msk.bf16.mxu1 %vm2656_vm0, %v2655_v0 }
 0x197   : > { %2362 = vmatprep.subr.bf16.mxu0 %v2655_v0  ;;  %2368 = vmatprep.subr.bf16.mxu1 %v2655_v0 }
 0x19c   : > { %2353 = vmatmul.mubr.msk.bf16.vlgmr.msra.gmra.mxu0 %vm1229_vm3, %v1214_v10  ;;  %2359 = vmatmul.mubr.msk.bf16.vlgmr.msra.gmra.mxu1 %vm1229_vm3, %v1215_v11 }
 0x19d   : > { %2364 = vmatprep.mubr.msk.bf16.mxu0 %vm2656_vm0, %v2655_v0  ;;  %2370 = vmatprep.mubr.msk.bf16.mxu1 %vm2656_vm0, %v2655_v0 }
 0x254   : > { %v1270_v12 = vpop.f32.mrf.mxu0  ;;  %v1316_v13 = vpop.f32.mrf.mxu1 }
 0x255   : > { %v1271_v14 = vadd.f32 %v1270_v12, %v2887_v25  ;;  %v1317_v15 = vadd.f32 %v1316_v13, %v2887_v25 }
 0x256   : > { %v2342_v16 = vpop.f32.mrf.mxu0  ;;  %v2348_v17 = vpop.f32.mrf.mxu1 }
 0x257   : > { %v1417_v18 = vsel %vm1229_vm3, %v1317_v15, -inf  ;;  %v1414_v19 = vsel %vm1229_vm3, %v1271_v14, -inf }
 0x258   : > { %1418 = vmax.xlane.f32.xlu1 %v1417_v18  ;;  %v1319_v20 = vpop.f32.mrf.mxu1  ;;  %1415 = vmax.xlane.f32.xlu0 %v1414_v19  ;;  %v1273_v21 = vpop.f32.mrf.mxu0 }
 0x25a   : > { %v2343_v22 = vpop.f32.mrf.mxu0  ;;  %v2349_v23 = vpop.f32.mrf.mxu1 }
 0x25c   : > { %v1362_v24 = vpop.f32.mrf.mxu0  ;;  %v1408_v26 = vpop.f32.mrf.mxu1 }
 0x25d   : > { %v1363_v27 = vadd.f32 %v1362_v24, %v2887_v25  ;;  %v1409_v30 = vadd.f32 %v1408_v26, %v2887_v25 }
 0x25e   : > { %v2354_v28 = vpop.f32.mrf.mxu0  ;;  %v2360_v29 = vpop.f32.mrf.mxu1 }
 0x25f   : > { %v1420_v33 = vsel %vm1229_vm3, %v1363_v27, -inf  ;;  %v1423_v41 = vsel %vm1229_vm3, %v1409_v30, -inf }
 0x260   : > { %v1411_v35 = vpop.f32.mrf.mxu1  ;;  %1421 = vmax.xlane.f32.xlu0 %v1420_v33  ;;  %v1365_v36 = vpop.f32.mrf.mxu0 }
 0x262   : > { %v2355_v38 = vpop.f32.mrf.mxu0  ;;  %v2361_v39 = vpop.f32.mrf.mxu1 }
 0x264   : > { %1424 = vmax.xlane.f32.xlu0 %v1423_v41 }
 0x269   : > { %841 = vrot.lane.b32.xlu1 %v2875_v9, %s2662_s28 }
 0x26d   : > { %845 = vrot.lane.b32.xlu1 %v2899_v37, %s2662_s28 }
 0x271   : > { %847 = vrot.lane.b32.xlu1 %v2889_v31, %s2662_s28 }
 0x27a   : > { %843 = vrot.lane.b32.xlu0 %v2891_v32, %s2662_s28  ;;  %s2115_s28 = scalar_lea.hbm %s3185_s17, %s2277_s18 }
 0x2e1   : > { %v1419_v25 = vpop.xlane.xlu1 %1418  ;;  %v1416_v42 = vpop.xlane.xlu0 %1415 }
 0x2e2   : > { %v1427_v43 = vsub.f32 %v1317_v15, %v1419_v25  ;;  %v1426_v44 = vsub.f32 %v1271_v14, %v1416_v42 }
 0x2e4   : > { %v1432_v45 = vmul.f32 1.442695, %v1427_v43  ;;  %v1430_v46 = vmul.f32 1.442695, %v1426_v44 }
 0x2e5   : > { %v842_v47 = vpop.permute.xlu1 %841 }
 0x2e6   : > { %2526 = vpow2.f32 %v1432_v45 }
 0x2e7   : > { %2528 = vpow2.f32 %v1430_v46 }
 0x2e9   : > { %v1422_v48 = vpop.xlane.xlu0 %1421  ;;  %v846_v50 = vpop.permute.xlu1 %845 }
 0x2ea   : > { %v1428_v49 = vsub.f32 %v1363_v27, %v1422_v48  ;;  %v853_v52 = vcombine.low %v842_v47, %v846_v50  ;;  %v854_v31 = vcombine.high %v842_v47, %v846_v50 }
 0x2ec   : > { %v1434_v51 = vmul.f32 1.442695, %v1428_v49  ;;  %v861_v58 = vrot.slane %v853_v52, %v2893_v34  ;;  %v868_v60 = vrot.slane %v854_v31, %v2893_v34 }
 0x2ed   : > { %v1425_v9 = vpop.xlane.xlu0 %1424  ;;  %v848_v32 = vpop.permute.xlu1 %847 }
 0x2ee   : > { %2530 = vpow2.f32 %v1434_v51  ;;  %v1429_v37 = vsub.f32 %v1409_v30, %v1425_v9 }
 0x2f0   : > { %v1436_v53 = vmul.f32 1.442695, %v1429_v37 }
 0x2f1   : > { %v844_v54 = vpop.permute.xlu0 %843 }
 0x2f2   : > { %2532 = vpow2.f32 %v1436_v53  ;;  %v869_v55 = vcombine.low %v844_v54, %v848_v32  ;;  %v870_v56 = vcombine.high %v844_v54, %v848_v32 }
 0x2f3   : > { %v2975_v57 = vpop.eup %2526 }
 0x2f4   : > { %v2978_v59 = vpop.eup %2528  ;;  %v877_v61 = vrot.slane %v869_v55, %v2893_v34  ;;  %v884_v62 = vrot.slane %v870_v56, %v2893_v34  ;;  %v1441_v63 = vsel %vm1229_vm3, %v2975_v57, 0.0 }
 0x2f5   : > { %1442 = vadd.xlane.f32.xlu1 %v1441_v63  ;;  %v1438_v1 = vsel %vm1229_vm3, %v2978_v59, 0.0 }
 0x2f6   : > { %v885_v2 = vcombine.low %v861_v58, %v877_v61  ;;  %v886_v3 = vcombine.high %v861_v58, %v877_v61  ;;  %v901_v4 = vcombine.low %v868_v60, %v884_v62  ;;  %v902_v5 = vcombine.high %v868_v60, %v884_v62  ;;  %1439 = vadd.xlane.f32.xlu0 %v1438_v1  ;;  %v1655_v58 = vld [vmem:[%s3175_s7] sm:$0xf] }
 0x2f7   : > { %v1663_v61 = vsel %vm1469_vm4, %v1655_v58, 0 }
 0x2f8   : > { %v893_v7 = vrot.slane %v885_v2, %v2905_v40  ;;  %v900_v8 = vrot.slane %v886_v3, %v2905_v40  ;;  %v909_v10 = vrot.slane %v901_v4, %v2905_v40  ;;  %v916_v11 = vrot.slane %v902_v5, %v2905_v40  ;;  %v1656_v2 = vld [vmem:[%s3175_s7 + $0x4] sm:$0xf]  ;;  %v1658_v4 = vld [vmem:[%s3175_s7 + $0xc] sm:$0xf]  ;;  %v1657_v5 = vld [vmem:[%s3175_s7 + $0x8] sm:$0xf] }
 0x2f9   : > { %v1709_v3 = vsel %vm1469_vm4, %v1656_v2, 0  ;;  %v2520_v2 = vld [vmem:[%s3181_s13 + $0x28] sm:$0xff]  }
 0x2fa   : > { %v921_v12 = vcombine.low %v893_v7, %v900_v8  ;;  %v2237_v13 = vcombine.high %v893_v7, %v900_v8  ;;  %v937_v14 = vcombine.low %v909_v10, %v916_v11  ;;  %v2238_v15 = vcombine.high %v909_v10, %v916_v11 }
 0x2fb   : > { %v2991_v16 = vpop.eup %2530  ;;  %v1801_v11 = vsel %vm1469_vm4, %v1658_v4, 0  ;;  %v2522_v4 = vld [vmem:[%s3181_s13 + $0x18] sm:$0xff]  }
 0x2fc   : > { %v928_v17 = vrot.slane %v921_v12, %v2893_v34  ;;  %v936_v18 = vrot.slane %v2237_v13, %v2893_v34  ;;  %v944_v19 = vrot.slane %v937_v14, %v2893_v34  ;;  %v952_v20 = vrot.slane %v2238_v15, %v2893_v34 }
 0x2fd   : > { %v1444_v21 = vsel %vm1229_vm3, %v2991_v16, 0.0  ;;  %v1755_v14 = vsel %vm1469_vm4, %v1657_v5, 0  ;;  %v2523_v5 = vld [vmem:[%s3181_s13 + $0x10] sm:$0xff]  }
 0x2fe   : > { %v953_v22 = vcombine.low %v928_v17, %v936_v18  ;;  %v954_v23 = vcombine.high %v928_v17, %v936_v18  ;;  %v969_v24 = vcombine.low %v944_v19, %v952_v20  ;;  %v970_v26 = vcombine.high %v944_v19, %v952_v20  ;;  %1445 = vadd.xlane.f32.xlu0 %v1444_v21 }
 0x2ff   : > { %v2533_v27 = vpop.eup %2532 }
 0x300   : > { %v961_v28 = vrot.slane %v953_v22, %v2905_v40  ;;  %v968_v29 = vrot.slane %v954_v23, %v2905_v40  ;;  %v977_v30 = vrot.slane %v969_v24, %v2905_v40  ;;  %v984_v33 = vrot.slane %v970_v26, %v2905_v40 }
 0x301   : > { %v1447_v35 = vsel %vm1229_vm3, %v2533_v27, 0.0 }
 0x302   : > { %v985_v34 = vcombine.low %v961_v28, %v977_v30  ;;  %v986_v36 = vcombine.high %v961_v28, %v977_v30  ;;  %v987_v38 = vcombine.low %v968_v29, %v984_v33  ;;  %v988_v39 = vcombine.high %v968_v29, %v984_v33  ;;  %1448 = vadd.xlane.f32.xlu0 %v1447_v35 }
 0x304   : > { %v989_v41 = vpack.c.bf16 %v985_v34, %v985_v34  ;;  %v990_v25 = vpack.c.bf16 %v986_v36, %v986_v36  ;;  %v991_v42 = vpack.c.bf16 %v987_v38, %v987_v38  ;;  %v992_v43 = vpack.c.bf16 %v988_v39, %v988_v39 }
 0x306   : > { %993 = vst.msk [vmem:[#allocation3] sm:$0xf] %vm836_vm2, %v989_v41  ;;  %994 = vst.msk [vmem:[#allocation3 + $0x4] sm:$0xf] %vm836_vm2, %v990_v25 }
 0x307   : > { %995 = vst.msk [vmem:[#allocation3 + $0x8] sm:$0xf] %vm836_vm2, %v991_v42  ;;  %996 = vst.msk [vmem:[#allocation3 + $0xc] sm:$0xf] %vm836_vm2, %v992_v43 }
 0x30d   : > { %v1462_v40 = vld [vmem:[#allocation3] sm:$0xf]  ;;  %v1463_v44 = vld [vmem:[#allocation3 + $0x4] sm:$0xf] }
 0x30e   : > { %v1471_v45 = vsel %vm1469_vm4, %v1462_v40, 0  ;;  %v1517_v46 = vsel %vm1469_vm4, %v1463_v44, 0  ;;  %v1465_v31 = vld [vmem:[#allocation3 + $0xc] sm:$0xf]  ;;  %v1464_v32 = vld [vmem:[#allocation3 + $0x8] sm:$0xf] }
 0x30f   : > { %2363 = vmatpush3.bf16.msra.mxu0 %v1471_v45  ;;  %2369 = vmatpush3.bf16.msra.mxu1 %v1517_v46  ;;  %v1609_v55 = vsel %vm1469_vm4, %v1465_v31, 0  ;;  %v1563_v56 = vsel %vm1469_vm4, %v1464_v32, 0  ;;  %v998_v31 = vunpack.c.l.bf16 %v2865_v6  ;;  %v2517_v6 = vld [vmem:[%s3179_s11] sm:$0xff]  }
 0x310   : > { %2374 = vmatprep.subr.bf16.mxu0 %v2655_v0  ;;  %2380 = vmatprep.subr.bf16.mxu1 %v2655_v0 }
 0x37e   : > { %v1443_v47 = vpop.xlane.xlu1 %1442 }
 0x37f   : > { %2534 = vrcp.f32 %v1443_v47  ;;  %v1440_v48 = vpop.xlane.xlu0 %1439 }
 0x380   : > { %2536 = vrcp.f32 %v1440_v48 }
 0x387   : > { %v1446_v49 = vpop.xlane.xlu0 %1445 }
 0x388   : > { %2538 = vrcp.f32 %v1446_v49 }
 0x38b   : > { %v1449_v50 = vpop.xlane.xlu0 %1448 }
 0x38c   : > { %v2535_v51 = vpop.eup %2534  ;;  %2540 = vrcp.f32 %v1449_v50 }
 0x38d   : > { %v2537_v9 = vpop.eup %2536  ;;  %v1455_v37 = vmul.f32 %v2535_v51, %v2975_v57  ;;  %v2258_v51 = vld [vmem:[%s3176_s8] ss:$0 sm:$0xff] }
 0x38e   : > { %v1454_v52 = vmul.f32 %v2537_v9, %v2978_v59 }
 0x38f   : > { %v1459_v53 = vpack.c.bf16 %v1455_v37, %v1455_v37 }
 0x390   : > { %v1458_v54 = vpack.c.bf16 %v1454_v52, %v1454_v52 }
 0x391   : > { %2371 = vmatmul.mubr.msk.bf16.vlgmr.msra.gmra.mxu1 %vm1229_vm3, %v1459_v53 }
 0x392   : > { %2365 = vmatmul.mubr.msk.bf16.vlgmr.msra.gmra.mxu0 %vm1229_vm3, %v1458_v54  ;;  %2381 = vmatpush3.bf16.msra.mxu1 %v1609_v55 }
 0x393   : > { %2375 = vmatpush3.bf16.msra.mxu0 %v1563_v56  ;;  %2376 = vmatprep.mubr.msk.bf16.mxu0 %vm2656_vm0, %v2655_v0 }
 0x394   : > { %2382 = vmatprep.mubr.msk.bf16.mxu1 %vm2656_vm0, %v2655_v0  ;;  %2386 = vmatprep.subr.bf16.mxu0 %v2655_v0 }
 0x395   : > { %v2539_v57 = vpop.eup %2538  ;;  %2392 = vmatprep.subr.bf16.mxu1 %v2655_v0 }
 0x396   : > { %v1456_v59 = vmul.f32 %v2539_v57, %v2991_v16 }
 0x398   : > { %v1460_v60 = vpack.c.bf16 %v1456_v59, %v1456_v59 }
 0x399   : > { %v2541_v62 = vpop.eup %2540 }
 0x39a   : > { %2377 = vmatmul.mubr.msk.bf16.vlgmr.msra.gmra.mxu0 %vm1229_vm3, %v1460_v60  ;;  %v1457_v63 = vmul.f32 %v2541_v62, %v2533_v27  ;;  %v2516_v62 = vld [vmem:[%s3179_s11 + $0x8] sm:$0xff]  }
 0x39b   : > { %2387 = vmatpush3.bf16.msra.mxu0 %v1663_v61  ;;  %2388 = vmatprep.mubr.msk.bf16.mxu0 %vm2656_vm0, %v2655_v0 }
 0x39c   : > { %v1461_v1 = vpack.c.bf16 %v1457_v63, %v1457_v63  ;;  %2398 = vmatprep.subr.bf16.mxu0 %v2655_v0  ;;  %v2518_v63 = vld [vmem:[%s3181_s13 + $0x38] sm:$0xff]  }
 0x39e   : > { %2383 = vmatmul.mubr.msk.bf16.vlgmr.msra.gmra.mxu1 %vm1229_vm3, %v1461_v1  ;;  %v2519_v1 = vld [vmem:[%s3181_s13 + $0x30] sm:$0xff]  }
 0x39f   : > { %2394 = vmatprep.mubr.msk.bf16.mxu1 %vm2656_vm0, %v2655_v0  ;;  %2393 = vmatpush3.bf16.msra.mxu1 %v1709_v3  ;;  %v2521_v3 = vld [vmem:[%s3181_s13 + $0x20] sm:$0xff]  }
 0x3a0   : > { %2404 = vmatprep.subr.bf16.mxu1 %v2655_v0 }
 0x451   : > { %v1553_v7 = vpop.f32.mrf.mxu1 }
 0x452   : > { %v1507_v8 = vpop.f32.mrf.mxu0  ;;  %v1652_v10 = vpack.c.bf16 %v1553_v7, %v1553_v7 }
 0x453   : > { %v1651_v12 = vpack.c.bf16 %v1507_v8, %v1507_v8  ;;  %v2372_v13 = vpop.f32.mrf.mxu1 }
 0x454   : > { %v2366_v15 = vpop.f32.mrf.mxu0  ;;  %2395 = vmatmul.mubr.msk.bf16.vlgmr.msra.gmra.mxu1 %vm1229_vm3, %v1652_v10 }
 0x455   : > { %2389 = vmatmul.mubr.msk.bf16.vlgmr.msra.gmra.mxu0 %vm1229_vm3, %v1651_v12  ;;  %v1556_v16 = vpop.f32.mrf.mxu1  ;;  %2405 = vmatpush3.bf16.msra.mxu1 %v1801_v11  ;;  %v2259_v12 = vld [vmem:[%s3177_s9] ss:$0 sm:$0xff] }
 0x456   : > { %v1510_v17 = vpop.f32.mrf.mxu0  ;;  %2399 = vmatpush3.bf16.msra.mxu0 %v1755_v14  ;;  %2400 = vmatprep.mubr.msk.bf16.mxu0 %vm2656_vm0, %v2655_v0  ;;  %v2260_v14 = vld [vmem:[%s3178_s10] ss:$0 sm:$0xff] }
 0x457   : > { %v2373_v18 = vpop.f32.mrf.mxu1  ;;  %2406 = vmatprep.mubr.msk.bf16.mxu1 %vm2656_vm0, %v2655_v0  ;;  %2410 = vmatprep.subr.bf16.mxu0 %v2655_v0 }
 0x458   : > { %v2367_v19 = vpop.f32.mrf.mxu0  ;;  %2418 = vmatprep.subr.bf16.mxu1 %v2655_v0  ;;  %v2524_v18 = vld [vmem:[%s3181_s13 + $0x8] sm:$0xff]  }
 0x459   : > { %v2525_v19 = vld [vmem:[%s3181_s13] sm:$0xff]  }
 0x45a   : > { %v1599_v20 = vpop.f32.mrf.mxu0 }
 0x45b   : > { %v1653_v21 = vpack.c.bf16 %v1599_v20, %v1599_v20  ;;  %v2261_v20 = vld [vmem:[#allocation4] ss:$0 sm:$0xff] }
 0x45c   : > { %v2378_v22 = vpop.f32.mrf.mxu0 }
 0x45d   : > { %2401 = vmatmul.mubr.msk.bf16.vlgmr.msra.gmra.mxu0 %vm1229_vm3, %v1653_v21 }
 0x45e   : > { %v1602_v23 = vpop.f32.mrf.mxu0  ;;  %v1645_v24 = vpop.f32.mrf.mxu1  ;;  %2414 = vmatprep.mubr.msk.bf16.mxu0 %vm2656_vm0, %v2655_v0  ;;  %2411 = vmatpush3.bf16.msra.mxu0 %v2516_v62 }
 0x45f   : > { %v1654_v26 = vpack.c.bf16 %v1645_v24, %v1645_v24  ;;  %2412 = vmatprep.subr.bf16.mxu0 %v2655_v0 }
 0x460   : > { %v2379_v27 = vpop.f32.mrf.mxu0  ;;  %v2384_v28 = vpop.f32.mrf.mxu1 }
 0x461   : > { %2407 = vmatmul.mubr.msk.bf16.vlgmr.msra.gmra.mxu1 %vm1229_vm3, %v1654_v26 }
 0x462   : > { %v1648_v29 = vpop.f32.mrf.mxu1  ;;  %2434 = vmatprep.mubr.msk.bf16.mxu1 %vm2656_vm0, %v2655_v0  ;;  %2413 = vmatpush3.bf16.msra.mxu0 %v2517_v6 }
 0x463   : > { %2419 = vmatpush3.bf16.msra.mxu1 %v2518_v63  ;;  %v2265_v29 = vld [vmem:[%s3182_s14] ss:$0 sm:$0xff] }
 0x464   : > { %v2385_v30 = vpop.f32.mrf.mxu1  ;;  %2420 = vmatprep.subr.bf16.mxu1 %v2655_v0 }
 0x467   : > { %2421 = vmatpush3.bf16.msra.mxu1 %v2519_v1 }
 0x468   : > { %2422 = vmatprep.subr.bf16.mxu1 %v2655_v0 }
 0x46b   : > { %2423 = vmatpush3.bf16.msra.mxu1 %v2520_v2 }
 0x46c   : > { %2424 = vmatprep.subr.bf16.mxu1 %v2655_v0 }
 0x46f   : > { %2425 = vmatpush3.bf16.msra.mxu1 %v2521_v3 }
 0x470   : > { %2426 = vmatprep.subr.bf16.mxu1 %v2655_v0 }
 0x473   : > { %2427 = vmatpush3.bf16.msra.mxu1 %v2522_v4 }
 0x474   : > { %2428 = vmatprep.subr.bf16.mxu1 %v2655_v0 }
 0x477   : > { %2429 = vmatpush3.bf16.msra.mxu1 %v2523_v5 }
 0x478   : > { %2430 = vmatprep.subr.bf16.mxu1 %v2655_v0 }
 0x47b   : > { %2431 = vmatpush3.bf16.msra.mxu1 %v2524_v18 }
 0x47c   : > { %2432 = vmatprep.subr.bf16.mxu1 %v2655_v0 }
 0x47f   : > { %2433 = vmatpush3.bf16.msra.mxu1 %v2525_v19 }
 0x514   : > { %v1745_v33 = vpop.f32.mrf.mxu1 }
 0x515   : > { %v1699_v35 = vpop.f32.mrf.mxu0  ;;  %v1844_v43 = vsel %vm642_vm1, %v1745_v33, 0.0 }
 0x516   : > { %v2396_v34 = vpop.f32.mrf.mxu1  ;;  %v1843_v42 = vsel %vm642_vm1, %v1699_v35, 0.0 }
 0x517   : > { %v2390_v36 = vpop.f32.mrf.mxu0  ;;  %v1845_v45 = vadd.f32 %v1844_v43, %v1843_v42 }
 0x518   : > { %v1748_v38 = vpop.f32.mrf.mxu1 }
 0x519   : > { %v1702_v39 = vpop.f32.mrf.mxu0 }
 0x51a   : > { %v2397_v41 = vpop.f32.mrf.mxu1 }
 0x51b   : > { %v2391_v25 = vpop.f32.mrf.mxu0 }
 0x51d   : > { %v1791_v40 = vpop.f32.mrf.mxu0 }
 0x51e   : > { %v1846_v44 = vsel %vm642_vm1, %v1791_v40, 0.0 }
 0x51f   : > { %v2402_v46 = vpop.f32.mrf.mxu0  ;;  %v1847_v47 = vadd.f32 %v1846_v44, %v1845_v45 }
 0x521   : > { %v1794_v48 = vpop.f32.mrf.mxu0  ;;  %v1837_v49 = vpop.f32.mrf.mxu1 }
 0x522   : > { %v1848_v50 = vsel %vm642_vm1, %v1837_v49, 0.0  ;;  %v2275_v49 = vld [vmem:[%s3184_s16] ss:$0 sm:$0xff] }
 0x523   : > { %v1849_v9 = vadd.f32 %v1848_v50, %v1847_v47  ;;  %v2403_v37 = vpop.f32.mrf.mxu0  ;;  %v2408_v52 = vpop.f32.mrf.mxu1  ;;  %v2274_v47 = vld [vmem:[%s3183_s15] ss:$0 sm:$0xff] }
 0x525   : > { %v1857_v53 = vadd.f32 %v2258_v51, %v1849_v9  ;;  %v1840_v32 = vpop.f32.mrf.mxu1 }
 0x527   : > { %v2409_v54 = vpop.f32.mrf.mxu1  ;;  %v1858_v55 = vadd.f32 %v1857_v53, %v998_v31 }
 0x529   : > { %v1861_v56 = vsel %vm642_vm1, %v1858_v55, 0.0 }
 0x52a   : > { %1862 = vadd.xlane.f32.xlu1 %v1861_v56 }
 0x5b3   : > { %v1863_v57 = vpop.xlane.xlu1 %1862 }
 0x5b4   : > { %v1865_v58 = vmul.f32 0.03125, %v1863_v57 }
 0x5b6   : > { %v1866_v59 = vsub.f32 %v1858_v55, %v1865_v58 }
 0x5b8   : > { %v1867_v60 = vmul.f32 %v1866_v59, %v1866_v59 }
 0x5ba   : > { %v1868_v61 = vsel %vm642_vm1, %v1867_v60, 0.0 }
 0x5bb   : > { %1869 = vadd.xlane.f32.xlu0 %v1868_v61 }
 0x644   : > { %v1870_v7 = vpop.xlane.xlu0 %1869 }
 0x645   : > { %v1871_v8 = vmul.f32 0.03125, %v1870_v7 }
 0x647   : > { %v1872_v10 = vadd.f32 1e-05, %v1871_v8 }
 0x649   : > { %2542 = vrsqrt.f32 %v1872_v10 }
 0x656   : > { %v2543_v11 = vpop.eup %2542 }
 0x657   : > { %v1874_v13 = vmul.f32 %v2543_v11, %v1866_v59 }
 0x659   : > { %v1881_v15 = vmul.f32 %v2259_v12, %v1874_v13 }
 0x65b   : > { %v1888_v16 = vadd.f32 %v2260_v14, %v1881_v15 }
 0x65d   : > { %v1889_v17 = vpack.c.bf16 %v1888_v16, %v1888_v16 }
 0x65f   : > { %2415 = vmatmul.mubr.msk.bf16.vlgmr.msra.gmra.mxu0 %vm642_vm1, %v1889_v17 }
 0x71f   : > { %v1950_v21 = vpop.f32.mrf.mxu0 }
 0x720   : > { %v1951_v22 = vadd.f32 %v2261_v20, %v1950_v21 }
 0x721   : > { %v2416_v23 = vpop.f32.mrf.mxu0 }
 0x722   : > { %v1956_v24 = vmax.f32 %v1951_v22, 0.0 }
 0x723   : > { %v1953_v26 = vpop.f32.mrf.mxu0 }
 0x724   : > { %v1957_v27 = vpack.c.bf16 %v1956_v24, %v1956_v24 }
 0x725   : > { %v2417_v28 = vpop.f32.mrf.mxu0 }
 0x726   : > { %2435 = vmatmul.mubr.bf16.vlgmr.msra.gmra.mxu1 %v1957_v27 }
 0x7e6   : > { %v2063_v30 = vpop.f32.mrf.mxu1 }
 0x7e7   : > { %v2064_v0 = vadd.f32 %v2265_v29, %v2063_v30 }
 0x7e8   : > { %v2436_v33 = vpop.f32.mrf.mxu1 }
 0x7e9   : > { %v2069_v35 = vadd.f32 %v2064_v0, %v1888_v16 }
 0x7ea   : > { %v2066_v34 = vpop.f32.mrf.mxu1 }
 0x7eb   : > { %v2072_v36 = vsel %vm642_vm1, %v2069_v35, 0.0 }
 0x7ec   : > { %2073 = vadd.xlane.f32.xlu1 %v2072_v36  ;;  %v2437_v38 = vpop.f32.mrf.mxu1 }
 0x875   : > { %v2074_v39 = vpop.xlane.xlu1 %2073 }
 0x876   : > { %v2075_v41 = vmul.f32 0.03125, %v2074_v39 }
 0x878   : > { %v2076_v25 = vsub.f32 %v2069_v35, %v2075_v41 }
 0x87a   : > { %v2077_v42 = vmul.f32 %v2076_v25, %v2076_v25 }
 0x87c   : > { %v2078_v43 = vsel %vm642_vm1, %v2077_v42, 0.0 }
 0x87d   : > { %2079 = vadd.xlane.f32.xlu0 %v2078_v43 }
 0x906   : > { %v2080_v40 = vpop.xlane.xlu0 %2079 }
 0x907   : > { %v2081_v44 = vmul.f32 0.03125, %v2080_v40 }
 0x909   : > { %v2082_v45 = vadd.f32 1e-05, %v2081_v44 }
 0x90b   : > { %2544 = vrsqrt.f32 %v2082_v45 }
 0x918   : > { %v2545_v46 = vpop.eup %2544 }
 0x919   : > { %v2084_v48 = vmul.f32 %v2545_v46, %v2076_v25 }
 0x91b   : > { %v2091_v50 = vmul.f32 %v2274_v47, %v2084_v48 }
 0x91d   : > { %v2098_v51 = vadd.f32 %v2275_v49, %v2091_v50 }
 0x91f   : > { %v2099_v9 = vpack.c.bf16 %v2098_v51, %v2098_v51 }
 0x921   : > { %2101 = vst.msk [vmem:[%s598_s23] sm:$0xf] %vm2100_vm5, %v2099_v9 }
 0x922   : > { %2585 = shalt.err (!%p2582_p3)
}
 0x923   : > { %s2586_s26 = scalar_lea.hbm %s2115_s28, 64  ;;  %s2590_s23 = scalar_lea.hbm %s3185_s17, 128 }
 0x924   : > { %p2587_p5 = scmp.ne.s32.totalorder %s2115_s28, %s2586_s26  ;;  %p2591_p9 = scmp.lt.s32.totalorder %s2115_s28, %s3185_s17 }
 0x925   : > { %p2592_p12 = scmp.lt.s32.totalorder %s2590_s23, %s2586_s26 }
 0x926   : > { %p2588_p6 = pnand %p2587_p5, %p2794_p4 }
 0x927   : > { %p2593_p10 = por %p2592_p12, %p2591_p9 }
 0x928   : > { %p2589_p7 = pneg %p2588_p6 }
 0x92a   : > { %p2594_p11 = pnand %p2593_p10, %p2589_p7 }
 0x92c   : > { %2597 = shalt.err (!%p2594_p11)
}
 0x92d   : > { %2442 = dma.vmem_to_hbm [thread:$0]  (%p2794_p4), %s2118_s12, 64, %s2115_s28, %s2103_s21  }
 0x92e PF: > { %s3207_s24 = sld [smem:[#allocation10_spill]]  ;;  %p2454_p13 = scmp.ge.s32.totalorder %s2652_s29, 2 }
 0x930   : > { %p2449_p0 = pnand %p2454_p13, %p2801_p8 }
 0x932   : > { %p2450_p1 = pneg %p2449_p0 }
 0x934   : > { %s2129_s0 = sand.u32 1, %s3207_s24  }
 0x935   : > { %s2130_s27 = scalar_lea.sflag [#allocation6], %s2129_s0 }
 0x936   : > { %2627 = dma.done.wait (%p2450_p1), %s2130_s27, 64  }
 0x937   : > { %2629 = vsyncadd (%p2450_p1), %s2130_s27, 4294967232  ;;  %s31_s29 = sadd.s32 1, %s2652_s29   ;;  %s3209_s26 = sld [smem:[#allocation11_spill]] }
 0x938   : > { %p28_p2 = scmp.ge.s32.totalorder %s31_s29, 4   ;;  %s3210_s20 = sld [smem:[#allocation15_spill]] }
 0x939   : > { %s3211_s27 = sld [smem:[#allocation12_spill]]  ;;  %s3213_s24 = smov %s2636_s25 }
 0x93a   : > { %s3212_s28 = sld [smem:[#allocation13_spill]]  ;;  %30 = sbr.rel (!%p28_p2) target bundleno = 9 (0x9), region = 138 }
 0x93d   : > { %s3214_s25 = smov %s3209_s26 }
 0x93e   : > { %s3215_s26 = smov %s3210_s20 }
 0x93f   :  { %2135 = vsyncpa [#allocation5], 1 }
 0x940   :  { %2137 = vsyncpa [#allocation5 + $0x1], 1 }
 0x941   :  { %2138 = vsyncpa [#allocation6], 1 }
 0x942   :  { %2140 = vsyncpa [#allocation6 + $0x1], 1 }

// kernel: tpu_custom_call.1
= control target key start
LH: loop header
LB: loop body
LE: loop exit
PB: predicated region body
PF: predicated region fallthrough
CT: control target
= control target key end

     0   :  { %s3168_s0 = inlined_call_operand.vmem [shape: bf16[2,8,32], index: 0, kind: input, shape index: {}]   ;;  %s3169_s1 = inlined_call_operand.vmem [shape: bf16[2,8,32], index: 1, kind: input, shape index: {}]   ;;  %s3170_s2 = inlined_call_operand.vmem [shape: f32[2,1,8], index: 2, kind: input, shape index: {}]   ;;  %s3171_s3 = inlined_call_operand.vmem [shape: bf16[32,32], index: 3, kind: input, shape index: {}]   ;;  %s3172_s4 = inlined_call_operand.vmem [shape: f32[1,32], index: 4, kind: input, shape index: {}]   ;;  %s3173_s5 = inlined_call_operand.vmem [shape: bf16[32,64], index: 5, kind: input, shape index: {}]   ;;  %s3174_s6 = inlined_call_operand.vmem [shape: f32[1,64], index: 6, kind: input, shape index: {}]   ;;  %s3175_s7 = inlined_call_operand.vmem [shape: bf16[4,8,32], index: 7, kind: input, shape index: {}]   ;;  %s3176_s8 = inlined_call_operand.vmem [shape: f32[1,32], index: 8, kind: input, shape index: {}]   ;;  %s3177_s9 = inlined_call_operand.vmem [shape: f32[1,32], index: 9, kind: input, shape index: {}]   ;;  %s3178_s10 = inlined_call_operand.vmem [shape: f32[1,32], index: 10, kind: input, shape index: {}]   ;;  %s3179_s11 = inlined_call_operand.vmem [shape: bf16[32,128], index: 11, kind: input, shape index: {}]   ;;  %s3180_s12 = inlined_call_operand.hbm [shape: f32[1,128], index: 12, kind: input, shape index: {}]   ;;  %s3181_s13 = inlined_call_operand.vmem [shape: bf16[128,32], index: 13, kind: input, shape index: {}]   ;;  %s3182_s14 = inlined_call_operand.vmem [shape: f32[1,32], index: 14, kind: input, shape index: {}]   ;;  %s3183_s15 = inlined_call_operand.vmem [shape: f32[1,32], index: 15, kind: input, shape index: {}]   ;;  %s3184_s16 = inlined_call_operand.vmem [shape: f32[1,32], index: 16, kind: input, shape index: {}]   ;;  %s3185_s17 = inlined_call_operand.hbm [shape: bf16[2,8,32], index: 17, kind: output, shape index: {}]  }
   0x1   :  { %3191 = sst [smem:[#allocation16_spill]] %s3168_s0 }
   0x2   :  { %3192 = sst [smem:[#allocation17_spill]] %s3169_s1 }
   0x3   :  { %3193 = sst [smem:[#allocation18_spill]] %s3180_s12 }
   0x4   :  { %22 = vsyncpa [#allocation5], 0 }
   0x5   :  { %23 = vsyncpa [#allocation6], 0 }
   0x6   :  { %25 = vsyncpa [#allocation6 + $0x1], 0  ;;  %s2754_s24 = smov 0   ;;  %s2756_s25 = smov 0  }
   0x7   :  { %s2758_s26 = smov 0   ;;  %s2760_s27 = smov 0  }
   0x8   :  { %s2762_s28 = smov 0   ;;  %s2764_s29 = smov 0  }
   0x9 LB: > { %3194 = sst [smem:[#allocation10_spill]] %s2632_s24  ;;  %s2221_s0 = sadd.s32 4294967295, %s2652_s29   ;;  %s2652_s29 = sphi %s2764_s29, %s31_s29   ;;  %s2648_s28 = sphi %s2762_s28, %s3212_s28   ;;  %s2644_s27 = sphi %s2760_s27, %s3211_s27   ;;  %s2640_s26 = sphi %s2758_s26, %s3215_s26   ;;  %s2636_s25 = sphi %s2756_s25, %s3214_s25   ;;  %s2632_s24 = sphi %s2754_s24, %s3213_s24  }
   0xa   : > { %3195 = sst [smem:[#allocation11_spill]] %s2640_s26  ;;  %s2222_s30 = sadd.s32 4294967294, %s2652_s29  }
   0xb   : > { %3196 = sst [smem:[#allocation12_spill]] %s2648_s28  ;;  %s43_s18 = sadd.s32 1, %s2648_s28 }
   0xc   : > { %s426_s19 = sadd.s32 1, %s2640_s26  ;;  %p45_p0 = scmp.ge.s32.totalorder %s43_s18, 2 }
   0xd   : > { %p436_p1 = scmp.ne.s32.totalorder %s2640_s26, %s2636_s25  ;;  %p437_p2 = scmp.eq.s32.totalorder %s2221_s0, 1 }
   0xe   : > { %p442_p3 = scmp.ne.s32.totalorder %s2636_s25, %s2632_s24  ;;  %s3217_s18 = smov (%p45_p0, %s43_s18), 0 }
   0xf   : > { %3197 = sst [smem:[#allocation13_spill]] %s3217_s18  ;;  %p2794_p4 = por %p437_p2, %p436_p1 }
  0x10   : > { %p443_p5 = scmp.eq.s32.totalorder %s2222_s30, 1  ;;  %s421_s20 = ssub.s32 %s2648_s28, %s3217_s18 }
  0x11   : > { %p2223_p6 = scmp.ge.s32.totalorder %s2652_s29, 1  ;;  %p424_p7 = scmp.eq.s32.totalorder %s421_s20, 0 }
  0x12   : > { %p2801_p8 = por %p443_p5, %p442_p3  ;;  %p450_p9 = scmp.lt.s32.totalorder %s2652_s29, 3 }
  0x13   : > { %s2807_s22 = scalar_select %p424_p7, %s2640_s26, %s426_s19  }
  0x14   : > { %s3199_s21 = scalar_select %p2801_p8, 1, 0 }
  0x15   : > { %3201 = sst [smem:[#allocation15_spill]] %s2807_s22  ;;  %p2809_p10 = pnand %p2223_p6, %p450_p9 }
  0x16   : > { %3200 = sst [smem:[#allocation14_spill]] %s3199_s21  ;;  %p2813_p11 = scmp.eq.s32.totalorder %s2221_s0, 0 }
  0x17   : > { %p2444_p12 = pneg %p2809_p10  ;;  %s2654_s30 = smov [#allocation4]  }
  0x18   : > { %s490_s20 = sshll.u32 %s2654_s30, 4  ;;  %s491_s20 = int_to_ptr.vmem [resolvable:$true] %s490_s20 }
  0x19   : > { %p2445_p13 = pnand %p2813_p11, %p2444_p12  ;;  %s2557_s19 = scalar_lea.vmem %s491_s20, 16 }
  0x1a   : > { %p2558_p1 = scmp.ne.s32.totalorder %s491_s20, %s2557_s19  ;;  %s2564_s18 = scalar_lea.vmem %s491_s20, 32 }
  0x1b   : > { %p2548_p0 = pneg %p2445_p13  ;;  %p2565_p5 = scmp.lt.s32.totalorder %s491_s20, %s491_s20 }
  0x1c   : > { %p2566_p6 = scmp.lt.s32.totalorder %s2564_s18, %s2557_s19 }
  0x1d   : > { %p2560_p2 = pnand %p2558_p1, %p2548_p0 }
  0x1e   : > { %p2567_p7 = por %p2566_p6, %p2565_p5 }
  0x1f   : > { %p2561_p3 = pneg %p2560_p2 }
  0x21   : > { %p2568_p9 = pnand %p2567_p7, %p2561_p3 }
  0x23   : > { %2571 = shalt.err (!%p2568_p9)
}
  0x24   : > { %s3204_s12 = sld [smem:[#allocation18_spill]] }
  0x26   : > { %538 = sbr.rel (%p2809_p10) target bundleno = 2350 (0x92e), region = 88 }
  0x2a   : > { %2447 = dma.hbm_to_vmem [thread:$0]  (!%p2445_p13), %s3204_s12, 16, %s491_s20, [#allocation5]  }
  0x2b   : > { %2623 = dma.done.wait (%p2813_p11), [#allocation5], 16  }
  0x2c   : > { %2625 = vsyncadd (%p2813_p11), [#allocation5], 4294967280  ;;  %p599_p12 = scmp.lt.s32.totalorder %s2644_s27, 1  ;;  %v2655_v0 = vmov 0.0   ;;  %vm2656_vm0 = vmmov 0   ;;  %v2512_v1 = vld [vmem:[%s3173_s5 + $0x8] sm:$0xff]   ;;  %v701_v20 = vlaneseq }
  0x2d   : > { %2322 = vmatprep.subr.bf16.mxu0 %v2655_v0  ;;  %2326 = vmatprep.mubr.msk.bf16.mxu0 %vm2656_vm0, %v2655_v0  ;;  %s3205_s19 = sld [smem:[#allocation17_spill]]  ;;  %v2513_v2 = vld [vmem:[%s3173_s5] sm:$0xff]   ;;  %vm642_vm1 = vcmask 261120   ;;  %v2514_v4 = vld [vmem:[%s3171_s3 + $0x8] sm:$0xff]   ;;  %s2659_s23 = smov 112   ;;  %vm836_vm2 = vcmask 60416  }
  0x2e   : > { %s2835_s28 = scalar_select %p599_p12, %s2644_s27, 1  ;;  %2344 = vmatprep.subr.bf16.mxu1 %v2655_v0  ;;  %2346 = vmatprep.mubr.msk.bf16.mxu1 %vm2656_vm0, %v2655_v0  ;;  %v2515_v5 = vld [vmem:[%s3171_s3] sm:$0xff]   ;;  %v702_v22 = vshrl.u32 %v701_v20, 7  ;;  %v2660_v26 = vmov 1983009808   ;;  %vm1229_vm3 = vcmask 64512  }
  0x2f   : > { %2323 = vmatpush3.bf16.msra.mxu0 %v2512_v1  ;;  %s3206_s30 = sld [smem:[#allocation16_spill]]  ;;  %v2231_v7 = vld [vmem:[%s3174_s6] ss:$0 sm:$0xff]  ;;  %v699_v27 = vunpack.c.l.s4 %v2660_v26  ;;  %v2661_v28 = vmov 1934713408   ;;  %vm1469_vm4 = vcmask 1043456  }
  0x30   : > { %s2229_s24 = sshll.u32 %s2835_s28, 2  ;;  %2324 = vmatprep.subr.bf16.mxu0 %v2655_v0  ;;  %v2239_v13 = vld [vmem:[%s3172_s4] ss:$0 sm:$0xff]  ;;  %v1226_v24 = vsub.s32 0, %v702_v22  ;;  %v731_v29 = vunpack.c.l.s4 %v2661_v28  ;;  %s2277_s18 = sshll.u32 %s2644_s27, 6  ;;  %vm2100_vm5 = vcmask 257024  }
  0x31   : > { %v700_v30 = vunpack.c.0.s8 %v699_v27 }
  0x32   : > { %v732_v33 = vunpack.c.0.s8 %v731_v29 }
  0x33   : > { %s609_s0 = scalar_lea.vmem %s3205_s19, %s2229_s24  ;;  %2325 = vmatpush3.bf16.msra.mxu0 %v2513_v2  ;;  %s2658_s19 = smov 120   ;;  %v2893_v34 = vsub.s32 %v700_v30, %v702_v22 }
  0x34   : > { %v618_v3 = vld [vmem:[%s609_s0] sm:$0xf]  ;;  %2330 = vmatprep.subr.bf16.mxu0 %v2655_v0  ;;  %v2905_v40 = vsub.s32 %v732_v33, %v702_v22 }
  0x35   : > { %s605_s20 = scalar_lea.vmem %s3206_s30, %s2229_s24  ;;  %s2657_s24 = smov 104  }
  0x36   : > { %2327 = vmatmul.mubr.msk.bf16.vlgmr.msra.gmra.mxu0 %vm642_vm1, %v618_v3  ;;  %v2865_v6 = vld [vmem:[%s605_s20] sm:$0xf]  ;;  %s612_s30 = scalar_lea.vmem %s3170_s2, %s2835_s28  ;;  %s2662_s28 = smov 96  }
  0x37   : > { %2331 = vmatpush3.bf16.msra.mxu0 %v2514_v4  ;;  %2334 = vmatprep.mubr.msk.bf16.mxu0 %vm2656_vm0, %v2655_v0  ;;  %v1220_v19 = vld [vmem:[%s612_s30] sm:$0x1]  ;;  %s596_s20 = sand.u32 1, %s2636_s25  }
  0x38   : > { %2332 = vmatprep.subr.bf16.mxu0 %v2655_v0  ;;  %v2245_v21 = vadd.f32 -1.0, %v1220_v19  ;;  %s2228_s26 = sshll.u32 %s596_s20, 2  ;;  %s2103_s21 = scalar_lea.sflag [#allocation6], %s596_s20 }
  0x3a   : > { %v1222_v23 = vmul.f32 1e+09, %v2245_v21 }
  0x3b   : > { %2333 = vmatpush3.bf16.msra.mxu0 %v2515_v5 }
  0x3c   : > { %2338 = vmatprep.subr.bf16.mxu0 %v2655_v0  ;;  %v2887_v25 = vrot.slane %v1222_v23, %v1226_v24 }
  0x3e   : > { %2335 = vmatmul.mubr.msk.bf16.vlgmr.msra.gmra.mxu0 %vm642_vm1, %v2865_v6 }
  0x3f   : > { %2340 = vmatprep.mubr.msk.bf16.mxu0 %vm2656_vm0, %v2655_v0 }
  0xf6   : > { %v680_v8 = vpop.f32.mrf.mxu0 }
  0xf7   : > { %v2875_v9 = vadd.f32 %v2231_v7, %v680_v8 }
  0xf8   : > { %v2328_v10 = vpop.f32.mrf.mxu0 }
  0xf9   : > { %693 = vrot.lane.b32.xlu1 %v2875_v9, %s2657_s24  ;;  %687 = vrot.lane.b32.xlu0 %v2875_v9, %s2658_s19 }
  0xfa   : > { %v683_v11 = vpop.f32.mrf.mxu0 }
  0xfc   : > { %v2329_v12 = vpop.f32.mrf.mxu0 }
  0xfd   : > { %690 = vrot.lane.b32.xlu0 %v2875_v9, %s2659_s23 }
  0xfe   : > { %v1060_v14 = vpop.f32.mrf.mxu0 }
  0xff   : > { %v1061_v15 = vadd.f32 %v2239_v13, %v1060_v14 }
 0x100   : > { %v2336_v16 = vpop.f32.mrf.mxu0 }
 0x101   : > { %1070 = vrot.lane.b32.xlu0 %v1061_v15, %s2659_s23  ;;  %1067 = vrot.lane.b32.xlu1 %v1061_v15, %s2658_s19  ;;  %s598_s23 = scalar_lea.vmem [#allocation7], %s2228_s26  ;;  %s2663_s19 = smov [#allocation7]  }
 0x102   : > { %v1063_v17 = vpop.f32.mrf.mxu0  ;;  %s2117_s12 = sshll.u32 %s598_s23, 4  ;;  %s2576_s0 = sshll.u32 %s2663_s19, 4  ;;  %s2118_s12 = int_to_ptr.vmem [resolvable:$true] %s2117_s12  ;;  %s2577_s0 = int_to_ptr.vmem [resolvable:$false] %s2576_s0 }
 0x103   : > { %s2578_s27 = scalar_lea.vmem %s2577_s0, 128  ;;  %p2579_p0 = scmp.lt.s32.totalorder %s2118_s12, %s2577_s0 }
 0x104   : > { %v2337_v18 = vpop.f32.mrf.mxu0 }
 0x105   : > { %1073 = vrot.lane.b32.xlu1 %v1061_v15, %s2657_s24  ;;  %s2572_s24 = scalar_lea.vmem %s2118_s12, 64 }
 0x106   : > { %p2573_p10 = scmp.ne.s32.totalorder %s2118_s12, %s2572_s24  ;;  %p2580_p1 = scmp.lt.s32.totalorder %s2578_s27, %s2572_s24 }
 0x108   : > { %p2574_p11 = pnand %p2573_p10, %p2794_p4  ;;  %p2581_p2 = por %p2580_p1, %p2579_p0 }
 0x10a   : > { %p2575_p13 = pneg %p2574_p11 }
 0x10c   : > { %p2582_p3 = pnand %p2581_p2, %p2575_p13 }
 0x16b   : > { %v2889_v31 = vpop.permute.xlu1 %693  ;;  %v2891_v32 = vpop.permute.xlu0 %687 }
 0x16c   : > { %v712_v35 = vcombine.low %v2891_v32, %v2889_v31  ;;  %v713_v36 = vcombine.high %v2891_v32, %v2889_v31 }
 0x16e   : > { %v720_v41 = vrot.slane %v712_v35, %v2893_v34  ;;  %v727_v42 = vrot.slane %v713_v36, %v2893_v34 }
 0x16f   : > { %v2899_v37 = vpop.permute.xlu0 %690 }
 0x170   : > { %v696_v38 = vcombine.low %v2875_v9, %v2899_v37  ;;  %v697_v39 = vcombine.high %v2875_v9, %v2899_v37 }
 0x172   : > { %v704_v43 = vrot.slane %v696_v38, %v2893_v34  ;;  %v711_v44 = vrot.slane %v697_v39, %v2893_v34 }
 0x173   : > { %v1068_v45 = vpop.permute.xlu1 %1067  ;;  %v1071_v50 = vpop.permute.xlu0 %1070 }
 0x174   : > { %v728_v46 = vcombine.low %v704_v43, %v720_v41  ;;  %v729_v47 = vcombine.high %v704_v43, %v720_v41  ;;  %v744_v48 = vcombine.low %v711_v44, %v727_v42  ;;  %v745_v49 = vcombine.high %v711_v44, %v727_v42 }
 0x175   : > { %v1076_v55 = vcombine.low %v1061_v15, %v1071_v50  ;;  %v1077_v56 = vcombine.high %v1061_v15, %v1071_v50 }
 0x176   : > { %v736_v51 = vrot.slane %v728_v46, %v2905_v40  ;;  %v743_v52 = vrot.slane %v729_v47, %v2905_v40  ;;  %v752_v53 = vrot.slane %v744_v48, %v2905_v40  ;;  %v759_v54 = vrot.slane %v745_v49, %v2905_v40 }
 0x177   : > { %v1074_v57 = vpop.permute.xlu1 %1073  ;;  %v1084_v5 = vrot.slane %v1076_v55, %v2893_v34  ;;  %v1091_v7 = vrot.slane %v1077_v56, %v2893_v34 }
 0x178   : > { %v764_v58 = vcombine.low %v736_v51, %v743_v52  ;;  %v2235_v59 = vcombine.high %v736_v51, %v743_v52  ;;  %v780_v60 = vcombine.low %v752_v53, %v759_v54  ;;  %v2236_v61 = vcombine.high %v752_v53, %v759_v54 }
 0x179   : > { %v1092_v62 = vcombine.low %v1068_v45, %v1074_v57  ;;  %v1093_v63 = vcombine.high %v1068_v45, %v1074_v57 }
 0x17a   : > { %v771_v1 = vrot.slane %v764_v58, %v2893_v34  ;;  %v779_v2 = vrot.slane %v2235_v59, %v2893_v34  ;;  %v787_v3 = vrot.slane %v780_v60, %v2893_v34  ;;  %v795_v4 = vrot.slane %v2236_v61, %v2893_v34 }
 0x17b   : > { %v1100_v8 = vrot.slane %v1092_v62, %v2893_v34  ;;  %v1107_v10 = vrot.slane %v1093_v63, %v2893_v34 }
 0x17c   : > { %v796_v11 = vcombine.low %v771_v1, %v779_v2  ;;  %v797_v12 = vcombine.high %v771_v1, %v779_v2  ;;  %v812_v13 = vcombine.low %v787_v3, %v795_v4  ;;  %v813_v14 = vcombine.high %v787_v3, %v795_v4 }
 0x17d   : > { %v1108_v15 = vcombine.low %v1084_v5, %v1100_v8  ;;  %v1109_v16 = vcombine.high %v1084_v5, %v1100_v8  ;;  %v1124_v17 = vcombine.low %v1091_v7, %v1107_v10  ;;  %v1125_v18 = vcombine.high %v1091_v7, %v1107_v10 }
 0x17e   : > { %v804_v19 = vrot.slane %v796_v11, %v2905_v40  ;;  %v811_v20 = vrot.slane %v797_v12, %v2905_v40  ;;  %v820_v21 = vrot.slane %v812_v13, %v2905_v40  ;;  %v827_v22 = vrot.slane %v813_v14, %v2905_v40 }
 0x17f   : > { %v1116_v23 = vrot.slane %v1108_v15, %v2905_v40  ;;  %v1123_v24 = vrot.slane %v1109_v16, %v2905_v40  ;;  %v1132_v26 = vrot.slane %v1124_v17, %v2905_v40  ;;  %v1139_v27 = vrot.slane %v1125_v18, %v2905_v40 }
 0x180   : > { %v828_v28 = vcombine.low %v804_v19, %v820_v21  ;;  %v829_v29 = vcombine.high %v804_v19, %v820_v21  ;;  %v830_v30 = vcombine.low %v811_v20, %v827_v22  ;;  %v831_v33 = vcombine.high %v811_v20, %v827_v22 }
 0x181   : > { %v1144_v35 = vcombine.low %v1116_v23, %v1123_v24  ;;  %v2243_v36 = vcombine.high %v1116_v23, %v1123_v24  ;;  %v1160_v38 = vcombine.low %v1132_v26, %v1139_v27  ;;  %v2244_v39 = vcombine.high %v1132_v26, %v1139_v27 }
 0x182   : > { %v832_v41 = vpack.c.bf16 %v828_v28, %v828_v28  ;;  %v833_v42 = vpack.c.bf16 %v829_v29, %v829_v29  ;;  %v834_v43 = vpack.c.bf16 %v830_v30, %v830_v30  ;;  %v835_v44 = vpack.c.bf16 %v831_v33, %v831_v33 }
 0x183   : > { %v1151_v45 = vrot.slane %v1144_v35, %v2893_v34  ;;  %v1159_v46 = vrot.slane %v2243_v36, %v2893_v34  ;;  %v1167_v47 = vrot.slane %v1160_v38, %v2893_v34  ;;  %v1175_v48 = vrot.slane %v2244_v39, %v2893_v34 }
 0x184   : > { %837 = vst.msk [vmem:[#allocation2] sm:$0xf] %vm836_vm2, %v832_v41  ;;  %838 = vst.msk [vmem:[#allocation2 + $0x4] sm:$0xf] %vm836_vm2, %v833_v42 }
 0x185   : > { %839 = vst.msk [vmem:[#allocation2 + $0x8] sm:$0xf] %vm836_vm2, %v834_v43  ;;  %840 = vst.msk [vmem:[#allocation2 + $0xc] sm:$0xf] %vm836_vm2, %v835_v44  ;;  %v1176_v49 = vcombine.low %v1151_v45, %v1159_v46  ;;  %v1192_v50 = vcombine.low %v1167_v47, %v1175_v48  ;;  %v1177_v57 = vcombine.high %v1151_v45, %v1159_v46 }
 0x186   : > { %v1193_v58 = vcombine.high %v1167_v47, %v1175_v48 }
 0x187   : > { %v1184_v51 = vrot.slane %v1176_v49, %v2905_v40  ;;  %v1200_v52 = vrot.slane %v1192_v50, %v2905_v40  ;;  %v1191_v2 = vrot.slane %v1177_v57, %v2905_v40 }
 0x188   : > { %v1207_v3 = vrot.slane %v1193_v58, %v2905_v40 }
 0x189   : > { %v1208_v59 = vcombine.low %v1184_v51, %v1200_v52  ;;  %v1209_v60 = vcombine.high %v1184_v51, %v1200_v52 }
 0x18a   : > { %v1210_v7 = vcombine.low %v1191_v2, %v1207_v3  ;;  %v1211_v8 = vcombine.high %v1191_v2, %v1207_v3 }
 0x18b   : > { %v1216_v53 = vld [vmem:[#allocation2] sm:$0xf]  ;;  %v1217_v54 = vld [vmem:[#allocation2 + $0x4] sm:$0xf]  ;;  %v1212_v63 = vpack.c.bf16 %v1208_v59, %v1208_v59  ;;  %v1213_v1 = vpack.c.bf16 %v1209_v60, %v1209_v60 }
 0x18c   : > { %v1234_v55 = vsel %vm1229_vm3, %v1216_v53, 0  ;;  %v1280_v56 = vsel %vm1229_vm3, %v1217_v54, 0  ;;  %v1218_v61 = vld [vmem:[#allocation2 + $0x8] sm:$0xf]  ;;  %v1219_v62 = vld [vmem:[#allocation2 + $0xc] sm:$0xf]  ;;  %v1214_v10 = vpack.c.bf16 %v1210_v7, %v1210_v7  ;;  %v1215_v11 = vpack.c.bf16 %v1211_v8, %v1211_v8 }
 0x18d   : > { %2339 = vmatpush3.bf16.xpose.msra.mxu0 %v1234_v55  ;;  %2345 = vmatpush3.bf16.xpose.msra.mxu1 %v1280_v56  ;;  %v1326_v4 = vsel %vm1229_vm3, %v1218_v61, 0  ;;  %v1372_v5 = vsel %vm1229_vm3, %v1219_v62, 0 }
 0x18e   : > { %2350 = vmatprep.subr.bf16.mxu0 %v2655_v0  ;;  %2356 = vmatprep.subr.bf16.mxu1 %v2655_v0 }
 0x194   : > { %2341 = vmatmul.mubr.msk.bf16.vlgmr.msra.gmra.mxu0 %vm1229_vm3, %v1212_v63  ;;  %2347 = vmatmul.mubr.msk.bf16.vlgmr.msra.gmra.mxu1 %vm1229_vm3, %v1213_v1 }
 0x195   : > { %2351 = vmatpush3.bf16.xpose.msra.mxu0 %v1326_v4  ;;  %2357 = vmatpush3.bf16.xpose.msra.mxu1 %v1372_v5 }
 0x196   : > { %2352 = vmatprep.mubr.msk.bf16.mxu0 %vm2656_vm0, %v2655_v0  ;;  %2358 = vmatprep.mubr.msk.bf16.mxu1 %vm2656_vm0, %v2655_v0 }
 0x197   : > { %2362 = vmatprep.subr.bf16.mxu0 %v2655_v0  ;;  %2368 = vmatprep.subr.bf16.mxu1 %v2655_v0 }
 0x19c   : > { %2353 = vmatmul.mubr.msk.bf16.vlgmr.msra.gmra.mxu0 %vm1229_vm3, %v1214_v10  ;;  %2359 = vmatmul.mubr.msk.bf16.vlgmr.msra.gmra.mxu1 %vm1229_vm3, %v1215_v11 }
 0x19d   : > { %2364 = vmatprep.mubr.msk.bf16.mxu0 %vm2656_vm0, %v2655_v0  ;;  %2370 = vmatprep.mubr.msk.bf16.mxu1 %vm2656_vm0, %v2655_v0 }
 0x254   : > { %v1270_v12 = vpop.f32.mrf.mxu0  ;;  %v1316_v13 = vpop.f32.mrf.mxu1 }
 0x255   : > { %v1271_v14 = vadd.f32 %v1270_v12, %v2887_v25  ;;  %v1317_v15 = vadd.f32 %v1316_v13, %v2887_v25 }
 0x256   : > { %v2342_v16 = vpop.f32.mrf.mxu0  ;;  %v2348_v17 = vpop.f32.mrf.mxu1 }
 0x257   : > { %v1417_v18 = vsel %vm1229_vm3, %v1317_v15, -inf  ;;  %v1414_v19 = vsel %vm1229_vm3, %v1271_v14, -inf }
 0x258   : > { %1418 = vmax.xlane.f32.xlu1 %v1417_v18  ;;  %v1319_v20 = vpop.f32.mrf.mxu1  ;;  %1415 = vmax.xlane.f32.xlu0 %v1414_v19  ;;  %v1273_v21 = vpop.f32.mrf.mxu0 }
 0x25a   : > { %v2343_v22 = vpop.f32.mrf.mxu0  ;;  %v2349_v23 = vpop.f32.mrf.mxu1 }
 0x25c   : > { %v1362_v24 = vpop.f32.mrf.mxu0  ;;  %v1408_v26 = vpop.f32.mrf.mxu1 }
 0x25d   : > { %v1363_v27 = vadd.f32 %v1362_v24, %v2887_v25  ;;  %v1409_v30 = vadd.f32 %v1408_v26, %v2887_v25 }
 0x25e   : > { %v2354_v28 = vpop.f32.mrf.mxu0  ;;  %v2360_v29 = vpop.f32.mrf.mxu1 }
 0x25f   : > { %v1420_v33 = vsel %vm1229_vm3, %v1363_v27, -inf  ;;  %v1423_v41 = vsel %vm1229_vm3, %v1409_v30, -inf }
 0x260   : > { %v1411_v35 = vpop.f32.mrf.mxu1  ;;  %1421 = vmax.xlane.f32.xlu0 %v1420_v33  ;;  %v1365_v36 = vpop.f32.mrf.mxu0 }
 0x262   : > { %v2355_v38 = vpop.f32.mrf.mxu0  ;;  %v2361_v39 = vpop.f32.mrf.mxu1 }
 0x264   : > { %1424 = vmax.xlane.f32.xlu0 %v1423_v41 }
 0x269   : > { %841 = vrot.lane.b32.xlu1 %v2875_v9, %s2662_s28 }
 0x26d   : > { %845 = vrot.lane.b32.xlu1 %v2899_v37, %s2662_s28 }
 0x271   : > { %847 = vrot.lane.b32.xlu1 %v2889_v31, %s2662_s28 }
 0x27a   : > { %843 = vrot.lane.b32.xlu0 %v2891_v32, %s2662_s28  ;;  %s2115_s28 = scalar_lea.hbm %s3185_s17, %s2277_s18 }
 0x2e1   : > { %v1419_v25 = vpop.xlane.xlu1 %1418  ;;  %v1416_v42 = vpop.xlane.xlu0 %1415 }
 0x2e2   : > { %v1427_v43 = vsub.f32 %v1317_v15, %v1419_v25  ;;  %v1426_v44 = vsub.f32 %v1271_v14, %v1416_v42 }
 0x2e4   : > { %v1432_v45 = vmul.f32 1.442695, %v1427_v43  ;;  %v1430_v46 = vmul.f32 1.442695, %v1426_v44 }
 0x2e5   : > { %v842_v47 = vpop.permute.xlu1 %841 }
 0x2e6   : > { %2526 = vpow2.f32 %v1432_v45 }
 0x2e7   : > { %2528 = vpow2.f32 %v1430_v46 }
 0x2e9   : > { %v1422_v48 = vpop.xlane.xlu0 %1421  ;;  %v846_v50 = vpop.permute.xlu1 %845 }
 0x2ea   : > { %v1428_v49 = vsub.f32 %v1363_v27, %v1422_v48  ;;  %v853_v52 = vcombine.low %v842_v47, %v846_v50  ;;  %v854_v31 = vcombine.high %v842_v47, %v846_v50 }
 0x2ec   : > { %v1434_v51 = vmul.f32 1.442695, %v1428_v49  ;;  %v861_v58 = vrot.slane %v853_v52, %v2893_v34  ;;  %v868_v60 = vrot.slane %v854_v31, %v2893_v34 }
 0x2ed   : > { %v1425_v9 = vpop.xlane.xlu0 %1424  ;;  %v848_v32 = vpop.permute.xlu1 %847 }
 0x2ee   : > { %2530 = vpow2.f32 %v1434_v51  ;;  %v1429_v37 = vsub.f32 %v1409_v30, %v1425_v9 }
 0x2f0   : > { %v1436_v53 = vmul.f32 1.442695, %v1429_v37 }
 0x2f1   : > { %v844_v54 = vpop.permute.xlu0 %843 }
 0x2f2   : > { %2532 = vpow2.f32 %v1436_v53  ;;  %v869_v55 = vcombine.low %v844_v54, %v848_v32  ;;  %v870_v56 = vcombine.high %v844_v54, %v848_v32 }
 0x2f3   : > { %v2975_v57 = vpop.eup %2526 }
 0x2f4   : > { %v2978_v59 = vpop.eup %2528  ;;  %v877_v61 = vrot.slane %v869_v55, %v2893_v34  ;;  %v884_v62 = vrot.slane %v870_v56, %v2893_v34  ;;  %v1441_v63 = vsel %vm1229_vm3, %v2975_v57, 0.0 }
 0x2f5   : > { %1442 = vadd.xlane.f32.xlu1 %v1441_v63  ;;  %v1438_v1 = vsel %vm1229_vm3, %v2978_v59, 0.0 }
 0x2f6   : > { %v885_v2 = vcombine.low %v861_v58, %v877_v61  ;;  %v886_v3 = vcombine.high %v861_v58, %v877_v61  ;;  %v901_v4 = vcombine.low %v868_v60, %v884_v62  ;;  %v902_v5 = vcombine.high %v868_v60, %v884_v62  ;;  %1439 = vadd.xlane.f32.xlu0 %v1438_v1  ;;  %v1655_v58 = vld [vmem:[%s3175_s7] sm:$0xf] }
 0x2f7   : > { %v1663_v61 = vsel %vm1469_vm4, %v1655_v58, 0 }
 0x2f8   : > { %v893_v7 = vrot.slane %v885_v2, %v2905_v40  ;;  %v900_v8 = vrot.slane %v886_v3, %v2905_v40  ;;  %v909_v10 = vrot.slane %v901_v4, %v2905_v40  ;;  %v916_v11 = vrot.slane %v902_v5, %v2905_v40  ;;  %v1656_v2 = vld [vmem:[%s3175_s7 + $0x4] sm:$0xf]  ;;  %v1658_v4 = vld [vmem:[%s3175_s7 + $0xc] sm:$0xf]  ;;  %v1657_v5 = vld [vmem:[%s3175_s7 + $0x8] sm:$0xf] }
 0x2f9   : > { %v1709_v3 = vsel %vm1469_vm4, %v1656_v2, 0  ;;  %v2520_v2 = vld [vmem:[%s3181_s13 + $0x28] sm:$0xff]  }
 0x2fa   : > { %v921_v12 = vcombine.low %v893_v7, %v900_v8  ;;  %v2237_v13 = vcombine.high %v893_v7, %v900_v8  ;;  %v937_v14 = vcombine.low %v909_v10, %v916_v11  ;;  %v2238_v15 = vcombine.high %v909_v10, %v916_v11 }
 0x2fb   : > { %v2991_v16 = vpop.eup %2530  ;;  %v1801_v11 = vsel %vm1469_vm4, %v1658_v4, 0  ;;  %v2522_v4 = vld [vmem:[%s3181_s13 + $0x18] sm:$0xff]  }
 0x2fc   : > { %v928_v17 = vrot.slane %v921_v12, %v2893_v34  ;;  %v936_v18 = vrot.slane %v2237_v13, %v2893_v34  ;;  %v944_v19 = vrot.slane %v937_v14, %v2893_v34  ;;  %v952_v20 = vrot.slane %v2238_v15, %v2893_v34 }
 0x2fd   : > { %v1444_v21 = vsel %vm1229_vm3, %v2991_v16, 0.0  ;;  %v1755_v14 = vsel %vm1469_vm4, %v1657_v5, 0  ;;  %v2523_v5 = vld [vmem:[%s3181_s13 + $0x10] sm:$0xff]  }
 0x2fe   : > { %v953_v22 = vcombine.low %v928_v17, %v936_v18  ;;  %v954_v23 = vcombine.high %v928_v17, %v936_v18  ;;  %v969_v24 = vcombine.low %v944_v19, %v952_v20  ;;  %v970_v26 = vcombine.high %v944_v19, %v952_v20  ;;  %1445 = vadd.xlane.f32.xlu0 %v1444_v21 }
 0x2ff   : > { %v2533_v27 = vpop.eup %2532 }
 0x300   : > { %v961_v28 = vrot.slane %v953_v22, %v2905_v40  ;;  %v968_v29 = vrot.slane %v954_v23, %v2905_v40  ;;  %v977_v30 = vrot.slane %v969_v24, %v2905_v40  ;;  %v984_v33 = vrot.slane %v970_v26, %v2905_v40 }
 0x301   : > { %v1447_v35 = vsel %vm1229_vm3, %v2533_v27, 0.0 }
 0x302   : > { %v985_v34 = vcombine.low %v961_v28, %v977_v30  ;;  %v986_v36 = vcombine.high %v961_v28, %v977_v30  ;;  %v987_v38 = vcombine.low %v968_v29, %v984_v33  ;;  %v988_v39 = vcombine.high %v968_v29, %v984_v33  ;;  %1448 = vadd.xlane.f32.xlu0 %v1447_v35 }
 0x304   : > { %v989_v41 = vpack.c.bf16 %v985_v34, %v985_v34  ;;  %v990_v25 = vpack.c.bf16 %v986_v36, %v986_v36  ;;  %v991_v42 = vpack.c.bf16 %v987_v38, %v987_v38  ;;  %v992_v43 = vpack.c.bf16 %v988_v39, %v988_v39 }
 0x306   : > { %993 = vst.msk [vmem:[#allocation3] sm:$0xf] %vm836_vm2, %v989_v41  ;;  %994 = vst.msk [vmem:[#allocation3 + $0x4] sm:$0xf] %vm836_vm2, %v990_v25 }
 0x307   : > { %995 = vst.msk [vmem:[#allocation3 + $0x8] sm:$0xf] %vm836_vm2, %v991_v42  ;;  %996 = vst.msk [vmem:[#allocation3 + $0xc] sm:$0xf] %vm836_vm2, %v992_v43 }
 0x30d   : > { %v1462_v40 = vld [vmem:[#allocation3] sm:$0xf]  ;;  %v1463_v44 = vld [vmem:[#allocation3 + $0x4] sm:$0xf] }
 0x30e   : > { %v1471_v45 = vsel %vm1469_vm4, %v1462_v40, 0  ;;  %v1517_v46 = vsel %vm1469_vm4, %v1463_v44, 0  ;;  %v1465_v31 = vld [vmem:[#allocation3 + $0xc] sm:$0xf]  ;;  %v1464_v32 = vld [vmem:[#allocation3 + $0x8] sm:$0xf] }
 0x30f   : > { %2363 = vmatpush3.bf16.msra.mxu0 %v1471_v45  ;;  %2369 = vmatpush3.bf16.msra.mxu1 %v1517_v46  ;;  %v1609_v55 = vsel %vm1469_vm4, %v1465_v31, 0  ;;  %v1563_v56 = vsel %vm1469_vm4, %v1464_v32, 0  ;;  %v998_v31 = vunpack.c.l.bf16 %v2865_v6  ;;  %v2517_v6 = vld [vmem:[%s3179_s11] sm:$0xff]  }
 0x310   : > { %2374 = vmatprep.subr.bf16.mxu0 %v2655_v0  ;;  %2380 = vmatprep.subr.bf16.mxu1 %v2655_v0 }
 0x37e   : > { %v1443_v47 = vpop.xlane.xlu1 %1442 }
 0x37f   : > { %2534 = vrcp.f32 %v1443_v47  ;;  %v1440_v48 = vpop.xlane.xlu0 %1439 }
 0x380   : > { %2536 = vrcp.f32 %v1440_v48 }
 0x387   : > { %v1446_v49 = vpop.xlane.xlu0 %1445 }
 0x388   : > { %2538 = vrcp.f32 %v1446_v49 }
 0x38b   : > { %v1449_v50 = vpop.xlane.xlu0 %1448 }
 0x38c   : > { %v2535_v51 = vpop.eup %2534  ;;  %2540 = vrcp.f32 %v1449_v50 }
 0x38d   : > { %v2537_v9 = vpop.eup %2536  ;;  %v1455_v37 = vmul.f32 %v2535_v51, %v2975_v57  ;;  %v2258_v51 = vld [vmem:[%s3176_s8] ss:$0 sm:$0xff] }
 0x38e   : > { %v1454_v52 = vmul.f32 %v2537_v9, %v2978_v59 }
 0x38f   : > { %v1459_v53 = vpack.c.bf16 %v1455_v37, %v1455_v37 }
 0x390   : > { %v1458_v54 = vpack.c.bf16 %v1454_v52, %v1454_v52 }
 0x391   : > { %2371 = vmatmul.mubr.msk.bf16.vlgmr.msra.gmra.mxu1 %vm1229_vm3, %v1459_v53 }
 0x392   : > { %2365 = vmatmul.mubr.msk.bf16.vlgmr.msra.gmra.mxu0 %vm1229_vm3, %v1458_v54  ;;  %2381 = vmatpush3.bf16.msra.mxu1 %v1609_v55 }
 0x393   : > { %2375 = vmatpush3.bf16.msra.mxu0 %v1563_v56  ;;  %2376 = vmatprep.mubr.msk.bf16.mxu0 %vm2656_vm0, %v2655_v0 }
 0x394   : > { %2382 = vmatprep.mubr.msk.bf16.mxu1 %vm2656_vm0, %v2655_v0  ;;  %2386 = vmatprep.subr.bf16.mxu0 %v2655_v0 }
 0x395   : > { %v2539_v57 = vpop.eup %2538  ;;  %2392 = vmatprep.subr.bf16.mxu1 %v2655_v0 }
 0x396   : > { %v1456_v59 = vmul.f32 %v2539_v57, %v2991_v16 }
 0x398   : > { %v1460_v60 = vpack.c.bf16 %v1456_v59, %v1456_v59 }
 0x399   : > { %v2541_v62 = vpop.eup %2540 }
 0x39a   : > { %2377 = vmatmul.mubr.msk.bf16.vlgmr.msra.gmra.mxu0 %vm1229_vm3, %v1460_v60  ;;  %v1457_v63 = vmul.f32 %v2541_v62, %v2533_v27  ;;  %v2516_v62 = vld [vmem:[%s3179_s11 + $0x8] sm:$0xff]  }
 0x39b   : > { %2387 = vmatpush3.bf16.msra.mxu0 %v1663_v61  ;;  %2388 = vmatprep.mubr.msk.bf16.mxu0 %vm2656_vm0, %v2655_v0 }
 0x39c   : > { %v1461_v1 = vpack.c.bf16 %v1457_v63, %v1457_v63  ;;  %2398 = vmatprep.subr.bf16.mxu0 %v2655_v0  ;;  %v2518_v63 = vld [vmem:[%s3181_s13 + $0x38] sm:$0xff]  }
 0x39e   : > { %2383 = vmatmul.mubr.msk.bf16.vlgmr.msra.gmra.mxu1 %vm1229_vm3, %v1461_v1  ;;  %v2519_v1 = vld [vmem:[%s3181_s13 + $0x30] sm:$0xff]  }
 0x39f   : > { %2394 = vmatprep.mubr.msk.bf16.mxu1 %vm2656_vm0, %v2655_v0  ;;  %2393 = vmatpush3.bf16.msra.mxu1 %v1709_v3  ;;  %v2521_v3 = vld [vmem:[%s3181_s13 + $0x20] sm:$0xff]  }
 0x3a0   : > { %2404 = vmatprep.subr.bf16.mxu1 %v2655_v0 }
 0x451   : > { %v1553_v7 = vpop.f32.mrf.mxu1 }
 0x452   : > { %v1507_v8 = vpop.f32.mrf.mxu0  ;;  %v1652_v10 = vpack.c.bf16 %v1553_v7, %v1553_v7 }
 0x453   : > { %v1651_v12 = vpack.c.bf16 %v1507_v8, %v1507_v8  ;;  %v2372_v13 = vpop.f32.mrf.mxu1 }
 0x454   : > { %v2366_v15 = vpop.f32.mrf.mxu0  ;;  %2395 = vmatmul.mubr.msk.bf16.vlgmr.msra.gmra.mxu1 %vm1229_vm3, %v1652_v10 }
 0x455   : > { %2389 = vmatmul.mubr.msk.bf16.vlgmr.msra.gmra.mxu0 %vm1229_vm3, %v1651_v12  ;;  %v1556_v16 = vpop.f32.mrf.mxu1  ;;  %2405 = vmatpush3.bf16.msra.mxu1 %v1801_v11  ;;  %v2259_v12 = vld [vmem:[%s3177_s9] ss:$0 sm:$0xff] }
 0x456   : > { %v1510_v17 = vpop.f32.mrf.mxu0  ;;  %2399 = vmatpush3.bf16.msra.mxu0 %v1755_v14  ;;  %2400 = vmatprep.mubr.msk.bf16.mxu0 %vm2656_vm0, %v2655_v0  ;;  %v2260_v14 = vld [vmem:[%s3178_s10] ss:$0 sm:$0xff] }
 0x457   : > { %v2373_v18 = vpop.f32.mrf.mxu1  ;;  %2406 = vmatprep.mubr.msk.bf16.mxu1 %vm2656_vm0, %v2655_v0  ;;  %2410 = vmatprep.subr.bf16.mxu0 %v2655_v0 }
 0x458   : > { %v2367_v19 = vpop.f32.mrf.mxu0  ;;  %2418 = vmatprep.subr.bf16.mxu1 %v2655_v0  ;;  %v2524_v18 = vld [vmem:[%s3181_s13 + $0x8] sm:$0xff]  }
 0x459   : > { %v2525_v19 = vld [vmem:[%s3181_s13] sm:$0xff]  }
 0x45a   : > { %v1599_v20 = vpop.f32.mrf.mxu0 }
 0x45b   : > { %v1653_v21 = vpack.c.bf16 %v1599_v20, %v1599_v20  ;;  %v2261_v20 = vld [vmem:[#allocation4] ss:$0 sm:$0xff] }
 0x45c   : > { %v2378_v22 = vpop.f32.mrf.mxu0 }
 0x45d   : > { %2401 = vmatmul.mubr.msk.bf16.vlgmr.msra.gmra.mxu0 %vm1229_vm3, %v1653_v21 }
 0x45e   : > { %v1602_v23 = vpop.f32.mrf.mxu0  ;;  %v1645_v24 = vpop.f32.mrf.mxu1  ;;  %2414 = vmatprep.mubr.msk.bf16.mxu0 %vm2656_vm0, %v2655_v0  ;;  %2411 = vmatpush3.bf16.msra.mxu0 %v2516_v62 }
 0x45f   : > { %v1654_v26 = vpack.c.bf16 %v1645_v24, %v1645_v24  ;;  %2412 = vmatprep.subr.bf16.mxu0 %v2655_v0 }
 0x460   : > { %v2379_v27 = vpop.f32.mrf.mxu0  ;;  %v2384_v28 = vpop.f32.mrf.mxu1 }
 0x461   : > { %2407 = vmatmul.mubr.msk.bf16.vlgmr.msra.gmra.mxu1 %vm1229_vm3, %v1654_v26 }
 0x462   : > { %v1648_v29 = vpop.f32.mrf.mxu1  ;;  %2434 = vmatprep.mubr.msk.bf16.mxu1 %vm2656_vm0, %v2655_v0  ;;  %2413 = vmatpush3.bf16.msra.mxu0 %v2517_v6 }
 0x463   : > { %2419 = vmatpush3.bf16.msra.mxu1 %v2518_v63  ;;  %v2265_v29 = vld [vmem:[%s3182_s14] ss:$0 sm:$0xff] }
 0x464   : > { %v2385_v30 = vpop.f32.mrf.mxu1  ;;  %2420 = vmatprep.subr.bf16.mxu1 %v2655_v0 }
 0x467   : > { %2421 = vmatpush3.bf16.msra.mxu1 %v2519_v1 }
 0x468   : > { %2422 = vmatprep.subr.bf16.mxu1 %v2655_v0 }
 0x46b   : > { %2423 = vmatpush3.bf16.msra.mxu1 %v2520_v2 }
 0x46c   : > { %2424 = vmatprep.subr.bf16.mxu1 %v2655_v0 }
 0x46f   : > { %2425 = vmatpush3.bf16.msra.mxu1 %v2521_v3 }
 0x470   : > { %2426 = vmatprep.subr.bf16.mxu1 %v2655_v0 }
 0x473   : > { %2427 = vmatpush3.bf16.msra.mxu1 %v2522_v4 }
 0x474   : > { %2428 = vmatprep.subr.bf16.mxu1 %v2655_v0 }
 0x477   : > { %2429 = vmatpush3.bf16.msra.mxu1 %v2523_v5 }
 0x478   : > { %2430 = vmatprep.subr.bf16.mxu1 %v2655_v0 }
 0x47b   : > { %2431 = vmatpush3.bf16.msra.mxu1 %v2524_v18 }
 0x47c   : > { %2432 = vmatprep.subr.bf16.mxu1 %v2655_v0 }
 0x47f   : > { %2433 = vmatpush3.bf16.msra.mxu1 %v2525_v19 }
 0x514   : > { %v1745_v33 = vpop.f32.mrf.mxu1 }
 0x515   : > { %v1699_v35 = vpop.f32.mrf.mxu0  ;;  %v1844_v43 = vsel %vm642_vm1, %v1745_v33, 0.0 }
 0x516   : > { %v2396_v34 = vpop.f32.mrf.mxu1  ;;  %v1843_v42 = vsel %vm642_vm1, %v1699_v35, 0.0 }
 0x517   : > { %v2390_v36 = vpop.f32.mrf.mxu0  ;;  %v1845_v45 = vadd.f32 %v1844_v43, %v1843_v42 }
 0x518   : > { %v1748_v38 = vpop.f32.mrf.mxu1 }
 0x519   : > { %v1702_v39 = vpop.f32.mrf.mxu0 }
 0x51a   : > { %v2397_v41 = vpop.f32.mrf.mxu1 }
 0x51b   : > { %v2391_v25 = vpop.f32.mrf.mxu0 }
 0x51d   : > { %v1791_v40 = vpop.f32.mrf.mxu0 }
 0x51e   : > { %v1846_v44 = vsel %vm642_vm1, %v1791_v40, 0.0 }
 0x51f   : > { %v2402_v46 = vpop.f32.mrf.mxu0  ;;  %v1847_v47 = vadd.f32 %v1846_v44, %v1845_v45 }
 0x521   : > { %v1794_v48 = vpop.f32.mrf.mxu0  ;;  %v1837_v49 = vpop.f32.mrf.mxu1 }
 0x522   : > { %v1848_v50 = vsel %vm642_vm1, %v1837_v49, 0.0  ;;  %v2275_v49 = vld [vmem:[%s3184_s16] ss:$0 sm:$0xff] }
 0x523   : > { %v1849_v9 = vadd.f32 %v1848_v50, %v1847_v47  ;;  %v2403_v37 = vpop.f32.mrf.mxu0  ;;  %v2408_v52 = vpop.f32.mrf.mxu1  ;;  %v2274_v47 = vld [vmem:[%s3183_s15] ss:$0 sm:$0xff] }
 0x525   : > { %v1857_v53 = vadd.f32 %v2258_v51, %v1849_v9  ;;  %v1840_v32 = vpop.f32.mrf.mxu1 }
 0x527   : > { %v2409_v54 = vpop.f32.mrf.mxu1  ;;  %v1858_v55 = vadd.f32 %v1857_v53, %v998_v31 }
 0x529   : > { %v1861_v56 = vsel %vm642_vm1, %v1858_v55, 0.0 }
 0x52a   : > { %1862 = vadd.xlane.f32.xlu1 %v1861_v56 }
 0x5b3   : > { %v1863_v57 = vpop.xlane.xlu1 %1862 }
 0x5b4   : > { %v1865_v58 = vmul.f32 0.03125, %v1863_v57 }
 0x5b6   : > { %v1866_v59 = vsub.f32 %v1858_v55, %v1865_v58 }
 0x5b8   : > { %v1867_v60 = vmul.f32 %v1866_v59, %v1866_v59 }
 0x5ba   : > { %v1868_v61 = vsel %vm642_vm1, %v1867_v60, 0.0 }
 0x5bb   : > { %1869 = vadd.xlane.f32.xlu0 %v1868_v61 }
 0x644   : > { %v1870_v7 = vpop.xlane.xlu0 %1869 }
 0x645   : > { %v1871_v8 = vmul.f32 0.03125, %v1870_v7 }
 0x647   : > { %v1872_v10 = vadd.f32 1e-05, %v1871_v8 }
 0x649   : > { %2542 = vrsqrt.f32 %v1872_v10 }
 0x656   : > { %v2543_v11 = vpop.eup %2542 }
 0x657   : > { %v1874_v13 = vmul.f32 %v2543_v11, %v1866_v59 }
 0x659   : > { %v1881_v15 = vmul.f32 %v2259_v12, %v1874_v13 }
 0x65b   : > { %v1888_v16 = vadd.f32 %v2260_v14, %v1881_v15 }
 0x65d   : > { %v1889_v17 = vpack.c.bf16 %v1888_v16, %v1888_v16 }
 0x65f   : > { %2415 = vmatmul.mubr.msk.bf16.vlgmr.msra.gmra.mxu0 %vm642_vm1, %v1889_v17 }
 0x71f   : > { %v1950_v21 = vpop.f32.mrf.mxu0 }
 0x720   : > { %v1951_v22 = vadd.f32 %v2261_v20, %v1950_v21 }
 0x721   : > { %v2416_v23 = vpop.f32.mrf.mxu0 }
 0x722   : > { %v1956_v24 = vmax.f32 %v1951_v22, 0.0 }
 0x723   : > { %v1953_v26 = vpop.f32.mrf.mxu0 }
 0x724   : > { %v1957_v27 = vpack.c.bf16 %v1956_v24, %v1956_v24 }
 0x725   : > { %v2417_v28 = vpop.f32.mrf.mxu0 }
 0x726   : > { %2435 = vmatmul.mubr.bf16.vlgmr.msra.gmra.mxu1 %v1957_v27 }
 0x7e6   : > { %v2063_v30 = vpop.f32.mrf.mxu1 }
 0x7e7   : > { %v2064_v0 = vadd.f32 %v2265_v29, %v2063_v30 }
 0x7e8   : > { %v2436_v33 = vpop.f32.mrf.mxu1 }
 0x7e9   : > { %v2069_v35 = vadd.f32 %v2064_v0, %v1888_v16 }
 0x7ea   : > { %v2066_v34 = vpop.f32.mrf.mxu1 }
 0x7eb   : > { %v2072_v36 = vsel %vm642_vm1, %v2069_v35, 0.0 }
 0x7ec   : > { %2073 = vadd.xlane.f32.xlu1 %v2072_v36  ;;  %v2437_v38 = vpop.f32.mrf.mxu1 }
 0x875   : > { %v2074_v39 = vpop.xlane.xlu1 %2073 }
 0x876   : > { %v2075_v41 = vmul.f32 0.03125, %v2074_v39 }
 0x878   : > { %v2076_v25 = vsub.f32 %v2069_v35, %v2075_v41 }
 0x87a   : > { %v2077_v42 = vmul.f32 %v2076_v25, %v2076_v25 }
 0x87c   : > { %v2078_v43 = vsel %vm642_vm1, %v2077_v42, 0.0 }
 0x87d   : > { %2079 = vadd.xlane.f32.xlu0 %v2078_v43 }
 0x906   : > { %v2080_v40 = vpop.xlane.xlu0 %2079 }
 0x907   : > { %v2081_v44 = vmul.f32 0.03125, %v2080_v40 }
 0x909   : > { %v2082_v45 = vadd.f32 1e-05, %v2081_v44 }
 0x90b   : > { %2544 = vrsqrt.f32 %v2082_v45 }
 0x918   : > { %v2545_v46 = vpop.eup %2544 }
 0x919   : > { %v2084_v48 = vmul.f32 %v2545_v46, %v2076_v25 }
 0x91b   : > { %v2091_v50 = vmul.f32 %v2274_v47, %v2084_v48 }
 0x91d   : > { %v2098_v51 = vadd.f32 %v2275_v49, %v2091_v50 }
 0x91f   : > { %v2099_v9 = vpack.c.bf16 %v2098_v51, %v2098_v51 }
 0x921   : > { %2101 = vst.msk [vmem:[%s598_s23] sm:$0xf] %vm2100_vm5, %v2099_v9 }
 0x922   : > { %2585 = shalt.err (!%p2582_p3)
}
 0x923   : > { %s2586_s26 = scalar_lea.hbm %s2115_s28, 64  ;;  %s2590_s23 = scalar_lea.hbm %s3185_s17, 128 }
 0x924   : > { %p2587_p5 = scmp.ne.s32.totalorder %s2115_s28, %s2586_s26  ;;  %p2591_p9 = scmp.lt.s32.totalorder %s2115_s28, %s3185_s17 }
 0x925   : > { %p2592_p12 = scmp.lt.s32.totalorder %s2590_s23, %s2586_s26 }
 0x926   : > { %p2588_p6 = pnand %p2587_p5, %p2794_p4 }
 0x927   : > { %p2593_p10 = por %p2592_p12, %p2591_p9 }
 0x928   : > { %p2589_p7 = pneg %p2588_p6 }
 0x92a   : > { %p2594_p11 = pnand %p2593_p10, %p2589_p7 }
 0x92c   : > { %2597 = shalt.err (!%p2594_p11)
}
 0x92d   : > { %2442 = dma.vmem_to_hbm [thread:$0]  (%p2794_p4), %s2118_s12, 64, %s2115_s28, %s2103_s21  }
 0x92e PF: > { %s3207_s24 = sld [smem:[#allocation10_spill]]  ;;  %p2454_p13 = scmp.ge.s32.totalorder %s2652_s29, 2 }
 0x930   : > { %p2449_p0 = pnand %p2454_p13, %p2801_p8 }
 0x932   : > { %p2450_p1 = pneg %p2449_p0 }
 0x934   : > { %s2129_s0 = sand.u32 1, %s3207_s24  }
 0x935   : > { %s2130_s27 = scalar_lea.sflag [#allocation6], %s2129_s0 }
 0x936   : > { %2627 = dma.done.wait (%p2450_p1), %s2130_s27, 64  }
 0x937   : > { %2629 = vsyncadd (%p2450_p1), %s2130_s27, 4294967232  ;;  %s31_s29 = sadd.s32 1, %s2652_s29   ;;  %s3209_s26 = sld [smem:[#allocation11_spill]] }
 0x938   : > { %p28_p2 = scmp.ge.s32.totalorder %s31_s29, 4   ;;  %s3210_s20 = sld [smem:[#allocation15_spill]] }
 0x939   : > { %s3211_s27 = sld [smem:[#allocation12_spill]]  ;;  %s3213_s24 = smov %s2636_s25 }
 0x93a   : > { %s3212_s28 = sld [smem:[#allocation13_spill]]  ;;  %30 = sbr.rel (!%p28_p2) target bundleno = 9 (0x9), region = 138 }
 0x93d   : > { %s3214_s25 = smov %s3209_s26 }
 0x93e   : > { %s3215_s26 = smov %s3210_s20 }
 0x93f   :  { %2135 = vsyncpa [#allocation5], 1 }
 0x940   :  { %2137 = vsyncpa [#allocation5 + $0x1], 1 }
 0x941   :  { %2138 = vsyncpa [#allocation6], 1 }
 0x942   :  { %2140 = vsyncpa [#allocation6 + $0x1], 1 }

</bundles_post_ra>
